<compile_context>
chip_gen: v6e
topology: v6e:2x2x1
jax: 0.10.0
libtpu: 0.0.40
codegen_flags: <defaults>
</compile_context>

<pallas_src>
import jax
import jax.numpy as jnp
from jax import lax
from jax.experimental import pallas as pl
from jax.experimental.pallas import tpu as pltpu

EPS = 1e-5  # PyTorch GroupNorm default


# ----------------------------------------------------------------------------
# Pallas kernel: one wide matmul (im2col'ed 3x3x3 conv) + GroupNorm + ReLU
#   p_ref    : (1, Kc, S)   patch slab, spatial S on the lane axis
#   wt_ref   : (Cout, Kc)   weight slab (columns match patch-row order)
#   gamma/beta: (Cout, 1)
#   out_ref  : (1, Cout, S) lane-dense output
# ----------------------------------------------------------------------------
def _make_conv_gn_relu_kernel(S, Cout, groups):
    cg = Cout // groups
    cnt = float(cg * S)

    def kernel(p_ref, wt_ref, gamma_ref, beta_ref, out_ref):
        acc = jnp.dot(wt_ref[...], p_ref[0],
                      preferred_element_type=jnp.float32)          # (Cout, S)

        # GroupNorm statistics: single traversal each for sum and sum-of-squares,
        # reduced along the lane (spatial) axis first.
        rsum = jnp.sum(acc, axis=1, keepdims=True)                  # (Cout, 1)
        rsumsq = jnp.sum(acc * acc, axis=1, keepdims=True)          # (Cout, 1)

        row = lax.broadcasted_iota(jnp.int32, (Cout, 1), 0)
        mean_rows = jnp.zeros((Cout, 1), jnp.float32)
        inv_rows = jnp.zeros((Cout, 1), jnp.float32)
        for g in range(groups):                                     # static, tiny
            gs = jnp.sum(rsum[g * cg:(g + 1) * cg, :])
            gss = jnp.sum(rsumsq[g * cg:(g + 1) * cg, :])
            m = gs / cnt
            v = gss / cnt - m * m                                    # E[x^2]-E[x]^2
            inv = lax.rsqrt(v + EPS)
            mask = (row >= g * cg) & (row < (g + 1) * cg)
            mean_rows = jnp.where(mask, m, mean_rows)
            inv_rows = jnp.where(mask, inv, inv_rows)

        scale = inv_rows * gamma_ref[...]                            # (Cout, 1)
        shift = beta_ref[...] - mean_rows * scale                    # (Cout, 1)
        y = acc * scale + shift                                      # lane broadcast
        out_ref[0] = jnp.maximum(y, 0.0)

    return kernel


# ----------------------------------------------------------------------------
# Wrapper-side im2col (lane-dense): (N, C, D, H, W) -> (N, K^3*C, D*H*W)
# patch rows ordered (kd, kh, kw, c) to match the weight slab below.
# ----------------------------------------------------------------------------
def _im2col_lane_dense(x, K):
    N, C, D, H, W = x.shape
    p = (K - 1) // 2
    xp = jnp.pad(x, ((0, 0), (0, 0), (p, p), (p, p), (p, p)))
    taps = []
    for kd in range(K):
        for kh in range(K):
            for kw in range(K):
                taps.append(xp[:, :, kd:kd + D, kh:kh + H, kw:kw + W])
    pat = jnp.stack(taps, axis=1)                       # (N, K^3, C, D, H, W)
    return pat.reshape(N, K * K * K * C, D * H * W)


def conv3d_gn_relu(x, w, gamma, beta, groups=2):
    """'same' 3D conv (stride 1, no bias) + GroupNorm(groups) + ReLU.

    x     : (N, Cin, D, H, W)   NCDHW (PyTorch layout)
    w     : (Cout, Cin, K, K, K) PyTorch Conv3d weight layout
    gamma, beta : (Cout,)
    """
    N, Cin, D, H, W = x.shape
    Cout, _, K, _, _ = w.shape
    assert Cout % groups == 0
    S = D * H * W
    Kc = K * K * K * Cin

    patches = _im2col_lane_dense(x.astype(jnp.float32), K)           # (N, Kc, S)
    # Weight slab (Cout, Kc) whose columns match the (kd, kh, kw, c) patch rows.
    w_t = jnp.transpose(w, (0, 2, 3, 4, 1)).reshape(Cout, Kc).astype(jnp.float32)
    gamma2 = gamma.reshape(Cout, 1).astype(jnp.float32)
    beta2 = beta.reshape(Cout, 1).astype(jnp.float32)

    kernel = _make_conv_gn_relu_kernel(S, Cout, groups)
    out = pl.pallas_call(
        kernel,
        out_shape=jax.ShapeDtypeStruct((N, Cout, S), jnp.float32),
        grid=(N,),
        in_specs=[
            pl.BlockSpec((1, Kc, S), lambda n: (n, 0, 0)),
            pl.BlockSpec((Cout, Kc), lambda n: (0, 0)),
            pl.BlockSpec((Cout, 1), lambda n: (0, 0)),
            pl.BlockSpec((Cout, 1), lambda n: (0, 0)),
        ],
        out_specs=pl.BlockSpec((1, Cout, S), lambda n: (n, 0, 0)),
        compiler_params=pltpu.CompilerParams(
            dimension_semantics=("parallel",)),
    )(patches, w_t, gamma2, beta2)
    # (N, Cout, S) with S = D*H*W row-major == NCDHW already.
    return out.reshape(N, Cout, D, H, W)


# ----------------------------------------------------------------------------
# unetConvBlock forward (conv_type='vgg', num_convs=2): two (conv -> GN -> ReLU)
# ----------------------------------------------------------------------------
def unet_conv_block(x, params, groups=2):
    y = conv3d_gn_relu(x, params["w1"], params["g1"], params["b1"], groups)
    y = conv3d_gn_relu(y, params["w2"], params["g2"], params["b2"], groups)
    return y


# ----------------------------------------------------------------------------
# Pure-JAX reference (correctness check)
# ----------------------------------------------------------------------------
def _ref_conv_gn_relu(x, w, gamma, beta, groups=2):
    K = w.shape[-1]
    p = (K - 1) // 2
    y = lax.conv_general_dilated(
        x, w, window_strides=(1, 1, 1), padding=[(p, p)] * 3,
        dimension_numbers=("NCDHW", "OIDHW", "NCDHW"),
        precision=lax.Precision.HIGHEST)
    N, C, D, H, W = y.shape
    yg = y.reshape(N, groups, (C // groups) * D * H * W)
    mean = jnp.mean(yg, axis=2, keepdims=True)
    var = jnp.mean((yg - mean) ** 2, axis=2, keepdims=True)   # biased, like PyTorch
    yn = ((yg - mean) * lax.rsqrt(var + EPS)).reshape(N, C, D, H, W)
    return jnp.maximum(yn * gamma.reshape(1, C, 1, 1, 1)
                       + beta.reshape(1, C, 1, 1, 1), 0.0)


def _ref_forward(x, params, groups=2):
    y = _ref_conv_gn_relu(x, params["w1"], params["g1"], params["b1"], groups)
    y = _ref_conv_gn_relu(y, params["w2"], params["g2"], params["b2"], groups)
    return y


# ----------------------------------------------------------------------------
if __name__ == "__main__":
    # unetConvBlock(in_cs=4, out_cs=8, norm_type='GN' (2 groups), num_convs=2,
    #               conv_type='vgg', p_mode='same')
    N, in_cs, out_cs = 2, 4, 8
    D = H = W = 16
    groups = 2

    key = jax.random.PRNGKey(0)
    kx, kw1, kw2, kg1, kb1, kg2, kb2 = jax.random.split(key, 7)

    x = jax.random.normal(kx, (N, in_cs, D, H, W), jnp.float32)
    params = {
        # PyTorch Conv3d weight layout: (out_c, in_c, kD, kH, kW), bias=False
        "w1": 0.1 * jax.random.normal(kw1, (out_cs, in_cs, 3, 3, 3), jnp.float32),
        "g1": 1.0 + 0.1 * jax.random.normal(kg1, (out_cs,), jnp.float32),
        "b1": 0.1 * jax.random.normal(kb1, (out_cs,), jnp.float32),
        "w2": 0.1 * jax.random.normal(kw2, (out_cs, out_cs, 3, 3, 3), jnp.float32),
        "g2": 1.0 + 0.1 * jax.random.normal(kg2, (out_cs,), jnp.float32),
        "b2": 0.1 * jax.random.normal(kb2, (out_cs,), jnp.float32),
    }

    out = jax.block_until_ready(unet_conv_block(x, params, groups=groups))
    assert out.shape == (N, out_cs, D, H, W), out.shape

    ref = jax.block_until_ready(_ref_forward(x, params, groups=groups))
    max_err = float(jnp.max(jnp.abs(out - ref)))
    assert jnp.allclose(out, ref, atol=1e-4, rtol=1e-4), max_err

    print("KERNEL_OK")
</pallas_src>

<mosaic_0001>
module attributes {stable_mosaic.version = 11 : i64} {
  func.func @kernel(%arg0: i32, %arg1: memref<1x108x4096xf32, #tpu.memory_space<vmem>>, %arg2: memref<8x108xf32, #tpu.memory_space<vmem>>, %arg3: memref<8x1xf32, #tpu.memory_space<vmem>>, %arg4: memref<8x1xf32, #tpu.memory_space<vmem>>, %arg5: memref<1x8x4096xf32, #tpu.memory_space<vmem>>) attributes {dimension_semantics = [#tpu.dimension_semantics<parallel>], iteration_bounds = array<i64: 2>, scalar_prefetch = 0 : i64, scratch_operands = 0 : i64, tpu.core_type = #tpu.core_type<tc>, window_params = [{transform_indices = @transform_0, window_bounds = array<i64: 1, 108, 4096>}, {pipeline_mode = #tpu.pipeline_mode<synchronous>, transform_indices = @transform_1, window_bounds = array<i64: 8, 108>}, {pipeline_mode = #tpu.pipeline_mode<synchronous>, transform_indices = @transform_2, window_bounds = array<i64: 8, 1>}, {pipeline_mode = #tpu.pipeline_mode<synchronous>, transform_indices = @transform_3, window_bounds = array<i64: 8, 1>}, {transform_indices = @transform_4, window_bounds = array<i64: 1, 8, 4096>}]} {
    %c0 = arith.constant 0 : index
    %c0_0 = arith.constant 0 : index
    %0 = vector.load %arg2[%c0, %c0_0] : memref<8x108xf32, #tpu.memory_space<vmem>>, vector<8x108xf32>
    %c0_1 = arith.constant 0 : index
    %c0_2 = arith.constant 0 : index
    %c0_3 = arith.constant 0 : index
    %1 = vector.load %arg1[%c0_1, %c0_2, %c0_3] : memref<1x108x4096xf32, #tpu.memory_space<vmem>>, vector<1x108x4096xf32>
    %2 = vector.shape_cast %1 : vector<1x108x4096xf32> to vector<108x4096xf32>
    %cst = arith.constant dense<0.000000e+00> : vector<8x4096xf32>
    %3 = tpu.matmul %0, %2, %cst {dimension_numbers = #tpu.dot_dimension_numbers<[1], [0], [0], [1], [0, 0, 1, 1], [], []>} : vector<8x108xf32>, vector<108x4096xf32>, vector<8x4096xf32> -> vector<8x4096xf32>
    %cst_4 = arith.constant dense<0.000000e+00> : vector<8xf32>
    %4 = vector.multi_reduction <add>, %3, %cst_4 [1] : vector<8x4096xf32> to vector<8xf32>
    %5 = vector.shape_cast %4 : vector<8xf32> to vector<8x1xf32>
    %6 = arith.mulf %3, %3 : vector<8x4096xf32>
    %cst_5 = arith.constant dense<0.000000e+00> : vector<8xf32>
    %7 = vector.multi_reduction <add>, %6, %cst_5 [1] : vector<8x4096xf32> to vector<8xf32>
    %8 = vector.shape_cast %7 : vector<8xf32> to vector<8x1xf32>
    %9 = tpu.iota {dimensions = array<i32: 0>} : vector<8x1xi32>
    %cst_6 = arith.constant 0.000000e+00 : f32
    %10 = vector.broadcast %cst_6 : f32 to vector<8x1xf32>
    %cst_7 = arith.constant 0.000000e+00 : f32
    %11 = vector.broadcast %cst_7 : f32 to vector<8x1xf32>
    %12 = vector.extract_strided_slice %5 {offsets = [0, 0], sizes = [4, 1], strides = [1, 1]} : vector<8x1xf32> to vector<4x1xf32>
    %13 = vector.shape_cast %12 : vector<4x1xf32> to vector<1x4x1xf32>
    %cst_8 = arith.constant dense<0.000000e+00> : vector<1xf32>
    %14 = vector.multi_reduction <add>, %13, %cst_8 [1, 2] : vector<1x4x1xf32> to vector<1xf32>
    %15 = vector.shape_cast %14 : vector<1xf32> to vector<1x1x1xf32>
    %16 = vector.extract %15[0, 0, 0] : f32 from vector<1x1x1xf32>
    %17 = vector.extract_strided_slice %8 {offsets = [0, 0], sizes = [4, 1], strides = [1, 1]} : vector<8x1xf32> to vector<4x1xf32>
    %18 = vector.shape_cast %17 : vector<4x1xf32> to vector<1x4x1xf32>
    %cst_9 = arith.constant dense<0.000000e+00> : vector<1xf32>
    %19 = vector.multi_reduction <add>, %18, %cst_9 [1, 2] : vector<1x4x1xf32> to vector<1xf32>
    %20 = vector.shape_cast %19 : vector<1xf32> to vector<1x1x1xf32>
    %21 = vector.extract %20[0, 0, 0] : f32 from vector<1x1x1xf32>
    %cst_10 = arith.constant 1.638400e+04 : f32
    %22 = arith.divf %16, %cst_10 : f32
    %cst_11 = arith.constant 1.638400e+04 : f32
    %23 = arith.divf %21, %cst_11 : f32
    %24 = arith.mulf %22, %22 : f32
    %25 = arith.subf %23, %24 : f32
    %cst_12 = arith.constant 9.99999974E-6 : f32
    %26 = arith.addf %25, %cst_12 : f32
    %27 = math.rsqrt %26 : f32
    %c0_i32 = arith.constant 0 : i32
    %28 = vector.broadcast %c0_i32 : i32 to vector<8x1xi32>
    %29 = arith.cmpi sge, %9, %28 : vector<8x1xi32>
    %c4_i32 = arith.constant 4 : i32
    %30 = vector.broadcast %c4_i32 : i32 to vector<8x1xi32>
    %31 = arith.cmpi slt, %9, %30 : vector<8x1xi32>
    %32 = arith.andi %29, %31 : vector<8x1xi1>
    %33 = vector.broadcast %22 : f32 to vector<8x1xf32>
    %34 = arith.select %32, %33, %10 : vector<8x1xi1>, vector<8x1xf32>
    %35 = vector.broadcast %27 : f32 to vector<8x1xf32>
    %36 = arith.select %32, %35, %11 : vector<8x1xi1>, vector<8x1xf32>
    %37 = vector.extract_strided_slice %5 {offsets = [4, 0], sizes = [4, 1], strides = [1, 1]} : vector<8x1xf32> to vector<4x1xf32>
    %38 = vector.shape_cast %37 : vector<4x1xf32> to vector<1x4x1xf32>
    %cst_13 = arith.constant dense<0.000000e+00> : vector<1xf32>
    %39 = vector.multi_reduction <add>, %38, %cst_13 [1, 2] : vector<1x4x1xf32> to vector<1xf32>
    %40 = vector.shape_cast %39 : vector<1xf32> to vector<1x1x1xf32>
    %41 = vector.extract %40[0, 0, 0] : f32 from vector<1x1x1xf32>
    %42 = vector.extract_strided_slice %8 {offsets = [4, 0], sizes = [4, 1], strides = [1, 1]} : vector<8x1xf32> to vector<4x1xf32>
    %43 = vector.shape_cast %42 : vector<4x1xf32> to vector<1x4x1xf32>
    %cst_14 = arith.constant dense<0.000000e+00> : vector<1xf32>
    %44 = vector.multi_reduction <add>, %43, %cst_14 [1, 2] : vector<1x4x1xf32> to vector<1xf32>
    %45 = vector.shape_cast %44 : vector<1xf32> to vector<1x1x1xf32>
    %46 = vector.extract %45[0, 0, 0] : f32 from vector<1x1x1xf32>
    %cst_15 = arith.constant 1.638400e+04 : f32
    %47 = arith.divf %41, %cst_15 : f32
    %cst_16 = arith.constant 1.638400e+04 : f32
    %48 = arith.divf %46, %cst_16 : f32
    %49 = arith.mulf %47, %47 : f32
    %50 = arith.subf %48, %49 : f32
    %cst_17 = arith.constant 9.99999974E-6 : f32
    %51 = arith.addf %50, %cst_17 : f32
    %52 = math.rsqrt %51 : f32
    %c4_i32_18 = arith.constant 4 : i32
    %53 = vector.broadcast %c4_i32_18 : i32 to vector<8x1xi32>
    %54 = arith.cmpi sge, %9, %53 : vector<8x1xi32>
    %c8_i32 = arith.constant 8 : i32
    %55 = vector.broadcast %c8_i32 : i32 to vector<8x1xi32>
    %56 = arith.cmpi slt, %9, %55 : vector<8x1xi32>
    %57 = arith.andi %54, %56 : vector<8x1xi1>
    %58 = vector.broadcast %47 : f32 to vector<8x1xf32>
    %59 = arith.select %57, %58, %34 : vector<8x1xi1>, vector<8x1xf32>
    %60 = vector.broadcast %52 : f32 to vector<8x1xf32>
    %61 = arith.select %57, %60, %36 : vector<8x1xi1>, vector<8x1xf32>
    %c0_19 = arith.constant 0 : index
    %c0_20 = arith.constant 0 : index
    %62 = vector.load %arg3[%c0_19, %c0_20] : memref<8x1xf32, #tpu.memory_space<vmem>>, vector<8x1xf32>
    %63 = arith.mulf %61, %62 : vector<8x1xf32>
    %c0_21 = arith.constant 0 : index
    %c0_22 = arith.constant 0 : index
    %64 = vector.load %arg4[%c0_21, %c0_22] : memref<8x1xf32, #tpu.memory_space<vmem>>, vector<8x1xf32>
    %65 = arith.mulf %59, %63 : vector<8x1xf32>
    %66 = arith.subf %64, %65 : vector<8x1xf32>
    %67 = vector.broadcast %63 : vector<8x1xf32> to vector<8x4096xf32>
    %68 = arith.mulf %3, %67 : vector<8x4096xf32>
    %69 = vector.broadcast %66 : vector<8x1xf32> to vector<8x4096xf32>
    %70 = arith.addf %68, %69 : vector<8x4096xf32>
    %cst_23 = arith.constant 0.000000e+00 : f32
    %71 = vector.broadcast %cst_23 : f32 to vector<8x4096xf32>
    %72 = arith.maximumf %70, %71 : vector<8x4096xf32>
    %c0_24 = arith.constant 0 : index
    %c0_25 = arith.constant 0 : index
    %c0_26 = arith.constant 0 : index
    %73 = vector.load %arg5[%c0_24, %c0_25, %c0_26] : memref<1x8x4096xf32, #tpu.memory_space<vmem>>, vector<1x8x4096xf32>
    %74 = vector.shape_cast %73 : vector<1x8x4096xf32> to vector<8x4096xf32>
    %75 = vector.shape_cast %72 : vector<8x4096xf32> to vector<1x8x4096xf32>
    tpu.vector_store %arg5[%c0_24, %c0_25, %c0_26], %75 {strides = array<i32>} : memref<1x8x4096xf32, #tpu.memory_space<vmem>>, vector<1x8x4096xf32>,
    return
  }
  func.func @transform_0(%arg0: i32) -> (i32, i32, i32) {
    %c0_i32 = arith.constant 0 : i32
    %c0_i32_0 = arith.constant 0 : i32
    %c0_i32_1 = arith.constant 0 : i32
    return %arg0, %c0_i32, %c0_i32_0 : i32, i32, i32
  }
  func.func @transform_1(%arg0: i32) -> (i32, i32) {
    %c0_i32 = arith.constant 0 : i32
    %c0_i32_0 = arith.constant 0 : i32
    %c0_i32_1 = arith.constant 0 : i32
    return %c0_i32, %c0_i32_0 : i32, i32
  }
  func.func @transform_2(%arg0: i32) -> (i32, i32) {
    %c0_i32 = arith.constant 0 : i32
    %c0_i32_0 = arith.constant 0 : i32
    %c0_i32_1 = arith.constant 0 : i32
    return %c0_i32, %c0_i32_0 : i32, i32
  }
  func.func @transform_3(%arg0: i32) -> (i32, i32) {
    %c0_i32 = arith.constant 0 : i32
    %c0_i32_0 = arith.constant 0 : i32
    %c0_i32_1 = arith.constant 0 : i32
    return %c0_i32, %c0_i32_0 : i32, i32
  }
  func.func @transform_4(%arg0: i32) -> (i32, i32, i32) {
    %c0_i32 = arith.constant 0 : i32
    %c0_i32_0 = arith.constant 0 : i32
    %c0_i32_1 = arith.constant 0 : i32
    return %arg0, %c0_i32, %c0_i32_0 : i32, i32, i32
  }
}

</mosaic_0001>

<bundles_post_ra>
// kernel: tpu_custom_call.1
= control target key start
LH: loop header
LB: loop body
LE: loop exit
PB: predicated region body
PF: predicated region fallthrough
CT: control target
= control target key end

     0   :  { %9 = vsyncpa [#allocation3], 0  ;;  %s3428_s0 = inlined_call_operand.vmem [shape: f32[2,108,4096], index: 0, kind: input, shape index: {}]   ;;  %s3429_s1 = inlined_call_operand.vmem [shape: f32[8,108], index: 1, kind: input, shape index: {}]   ;;  %s3430_s2 = inlined_call_operand.vmem [shape: f32[8,1], index: 2, kind: input, shape index: {}]   ;;  %s3431_s3 = inlined_call_operand.vmem [shape: f32[8,1], index: 3, kind: input, shape index: {}]   ;;  %s3432_s4 = inlined_call_operand.hbm [shape: f32[2,8,4096], index: 4, kind: output, shape index: {}]  }
   0x1   :  { %11 = vsyncpa [#allocation3 + $0x1], 0  ;;  %s2495_s15 = smov 0   ;;  %s2497_s16 = smov 0  }
   0x2   :  { %s2499_s17 = smov 0   ;;  %s2501_s18 = smov 0  }
   0x3 LB: > { %s2516_s19 = sadd.s32 4294967295, %s2465_s18   ;;  %s2284_s20 = sadd.s32 4294967294, %s2465_s18   ;;  %s2465_s18 = sphi %s2501_s18, %s3438_s18   ;;  %s2461_s17 = sphi %s2499_s17, %s3437_s17   ;;  %s2457_s16 = sphi %s2497_s16, %s3436_s16   ;;  %s2453_s15 = sphi %s2495_s15, %s3435_s15  }
   0x4   : > { %s2520_s21 = sadd.s32 1, %s2465_s18   ;;  %s113_s22 = sadd.s32 1, %s2461_s17 }
   0x5   : > { %s110_s23 = ssub.s32 %s2465_s18, %s2520_s21  ;;  %p123_p0 = scmp.ne.s32.totalorder %s2461_s17, %s2457_s16 }
   0x6   : > { %p111_p1 = scmp.eq.s32.totalorder %s110_s23, 0  ;;  %p124_p2 = scmp.eq.s32.totalorder %s2516_s19, 1 }
   0x7   : > { %p129_p3 = scmp.ne.s32.totalorder %s2457_s16, %s2453_s15  ;;  %p130_p4 = scmp.eq.s32.totalorder %s2284_s20, 1 }
   0x8   : > { %s2531_s24 = scalar_select %p111_p1, %s2461_s17, %s113_s22  }
   0x9   : > { %p2533_p5 = por %p124_p2, %p123_p0  ;;  %p2537_p6 = por %p130_p4, %p129_p3 }
   0xa   : > { %p2287_p7 = scmp.ge.s32.totalorder %s2465_s18, 1  ;;  %p165_p8 = scmp.lt.s32.totalorder %s2465_s18, 3 }
   0xc   : > { %p166_p9 = pnand %p2287_p7, %p165_p8 }
   0xd   : > { %p191_p10 = scmp.lt.s32.totalorder (!%p166_p9), %s2516_s19, 1 }
   0xe   : > { %169 = sbr.rel (%p166_p9) target bundleno = 1124 (0x464), region = 36 }
  0x13   : > { %v2467_v0 = vmov 0.0   ;;  %s192_s27 = scalar_select %p191_p10, %s2516_s19, 1  ;;  %vm649_vm0 = vcmask 1043456   ;;  %v2614_v56 = vld [vmem:[%s3429_s1] sm:$0xff]  ;;  %vm645_vm1 = vcmask 883712   ;;  %vm1982_vm2 = vcmask 3072  }
  0x14   : > { %810 = vmatprep.mubr.f32.mxu0 %v2467_v0  ;;  %881 = vmatprep.mubr.f32.mxu1 %v2467_v0 }
  0x15   : > { %s2344_s28 = smul.u32 3584, %s192_s27 }
  0x17   : > { %s2550_s5 = scalar_lea.vmem %s3428_s0, %s2344_s28 }
  0x18   : > { %v614_v1 = vld [vmem:[%s2550_s5 + $0xd08] sm:$0xf]  ;;  %v613_v2 = vld [vmem:[%s2550_s5 + $0xd00] sm:$0xf]  ;;  %v616_v4 = vld [vmem:[%s2550_s5 + $0xd18] sm:$0xf] }
  0x19   : > { %v582_v3 = vld [vmem:[%s2550_s5 + $0xc08] sm:$0xff]  ;;  %2290 = vmatprep.subr.msk.mxu0 %vm649_vm0, %v614_v1  ;;  %v581_v5 = vld [vmem:[%s2550_s5 + $0xc00] sm:$0xff]  ;;  %v615_v6 = vld [vmem:[%s2550_s5 + $0xd10] sm:$0xf]  ;;  %2293 = vmatprep.subr.msk.mxu1 %vm649_vm0, %v616_v4 }
  0x1a   : > { %2291 = vmatpush1.msk.msra.mxu0 %vm649_vm0, %v613_v2  ;;  %v550_v7 = vld [vmem:[%s2550_s5 + $0xb08] sm:$0xff]  ;;  %v584_v8 = vld [vmem:[%s2550_s5 + $0xc18] sm:$0xff]  ;;  %2294 = vmatpush1.msk.msra.mxu1 %vm649_vm0, %v615_v6  ;;  %v549_v9 = vld [vmem:[%s2550_s5 + $0xb00] sm:$0xff] }
  0x1b   : > { %752 = vmatprep.subr.mxu0 %v582_v3  ;;  %v583_v10 = vld [vmem:[%s2550_s5 + $0xc10] sm:$0xff]  ;;  %v552_v11 = vld [vmem:[%s2550_s5 + $0xb18] sm:$0xff]  ;;  %823 = vmatprep.subr.mxu1 %v584_v8  ;;  %v518_v12 = vld [vmem:[%s2550_s5 + $0xa08] sm:$0xff] }
  0x1c   : > { %753 = vmatpush1.msra.mxu0 %v581_v5  ;;  %v551_v13 = vld [vmem:[%s2550_s5 + $0xb10] sm:$0xff]  ;;  %824 = vmatpush1.msra.mxu1 %v583_v10  ;;  %v517_v14 = vld [vmem:[%s2550_s5 + $0xa00] sm:$0xff]  ;;  %v520_v15 = vld [vmem:[%s2550_s5 + $0xa18] sm:$0xff] }
  0x1d   : > { %754 = vmatprep.subr.mxu0 %v550_v7  ;;  %825 = vmatprep.subr.mxu1 %v552_v11  ;;  %v486_v16 = vld [vmem:[%s2550_s5 + $0x908] sm:$0xff]  ;;  %v519_v17 = vld [vmem:[%s2550_s5 + $0xa10] sm:$0xff]  ;;  %v485_v18 = vld [vmem:[%s2550_s5 + $0x900] sm:$0xff] }
  0x1e   : > { %755 = vmatpush1.msra.mxu0 %v549_v9  ;;  %826 = vmatpush1.msra.mxu1 %v551_v13  ;;  %v488_v19 = vld [vmem:[%s2550_s5 + $0x918] sm:$0xff]  ;;  %v454_v20 = vld [vmem:[%s2550_s5 + $0x808] sm:$0xff]  ;;  %v487_v21 = vld [vmem:[%s2550_s5 + $0x910] sm:$0xff] }
  0x1f   : > { %756 = vmatprep.subr.mxu0 %v518_v12  ;;  %827 = vmatprep.subr.mxu1 %v520_v15  ;;  %v453_v22 = vld [vmem:[%s2550_s5 + $0x800] sm:$0xff]  ;;  %v456_v23 = vld [vmem:[%s2550_s5 + $0x818] sm:$0xff]  ;;  %v422_v24 = vld [vmem:[%s2550_s5 + $0x708] sm:$0xff] }
  0x20   : > { %757 = vmatpush1.msra.mxu0 %v517_v14  ;;  %828 = vmatpush1.msra.mxu1 %v519_v17  ;;  %v455_v25 = vld [vmem:[%s2550_s5 + $0x810] sm:$0xff]  ;;  %v421_v26 = vld [vmem:[%s2550_s5 + $0x700] sm:$0xff]  ;;  %v424_v27 = vld [vmem:[%s2550_s5 + $0x718] sm:$0xff] }
  0x21   : > { %758 = vmatprep.subr.mxu0 %v486_v16  ;;  %829 = vmatprep.subr.mxu1 %v488_v19  ;;  %v390_v28 = vld [vmem:[%s2550_s5 + $0x608] sm:$0xff]  ;;  %v423_v29 = vld [vmem:[%s2550_s5 + $0x710] sm:$0xff]  ;;  %v389_v30 = vld [vmem:[%s2550_s5 + $0x600] sm:$0xff] }
  0x22   : > { %759 = vmatpush1.msra.mxu0 %v485_v18  ;;  %830 = vmatpush1.msra.mxu1 %v487_v21  ;;  %v392_v31 = vld [vmem:[%s2550_s5 + $0x618] sm:$0xff]  ;;  %v358_v32 = vld [vmem:[%s2550_s5 + $0x508] sm:$0xff]  ;;  %v391_v33 = vld [vmem:[%s2550_s5 + $0x610] sm:$0xff] }
  0x23   : > { %760 = vmatprep.subr.mxu0 %v454_v20  ;;  %831 = vmatprep.subr.mxu1 %v456_v23  ;;  %v357_v34 = vld [vmem:[%s2550_s5 + $0x500] sm:$0xff]  ;;  %v360_v35 = vld [vmem:[%s2550_s5 + $0x518] sm:$0xff]  ;;  %v326_v36 = vld [vmem:[%s2550_s5 + $0x408] sm:$0xff] }
  0x24   : > { %761 = vmatpush1.msra.mxu0 %v453_v22  ;;  %832 = vmatpush1.msra.mxu1 %v455_v25  ;;  %v359_v37 = vld [vmem:[%s2550_s5 + $0x510] sm:$0xff]  ;;  %v325_v38 = vld [vmem:[%s2550_s5 + $0x400] sm:$0xff]  ;;  %v328_v39 = vld [vmem:[%s2550_s5 + $0x418] sm:$0xff] }
  0x25   : > { %762 = vmatprep.subr.mxu0 %v422_v24  ;;  %833 = vmatprep.subr.mxu1 %v424_v27  ;;  %v294_v40 = vld [vmem:[%s2550_s5 + $0x308] sm:$0xff]  ;;  %v327_v41 = vld [vmem:[%s2550_s5 + $0x410] sm:$0xff]  ;;  %v293_v42 = vld [vmem:[%s2550_s5 + $0x300] sm:$0xff] }
  0x26   : > { %763 = vmatpush1.msra.mxu0 %v421_v26  ;;  %834 = vmatpush1.msra.mxu1 %v423_v29  ;;  %v296_v43 = vld [vmem:[%s2550_s5 + $0x318] sm:$0xff]  ;;  %v262_v44 = vld [vmem:[%s2550_s5 + $0x208] sm:$0xff]  ;;  %v295_v45 = vld [vmem:[%s2550_s5 + $0x310] sm:$0xff] }
  0x27   : > { %764 = vmatprep.subr.mxu0 %v390_v28  ;;  %835 = vmatprep.subr.mxu1 %v392_v31  ;;  %v261_v46 = vld [vmem:[%s2550_s5 + $0x200] sm:$0xff]  ;;  %v264_v47 = vld [vmem:[%s2550_s5 + $0x218] sm:$0xff]  ;;  %v230_v48 = vld [vmem:[%s2550_s5 + $0x108] sm:$0xff] }
  0x28   : > { %765 = vmatpush1.msra.mxu0 %v389_v30  ;;  %836 = vmatpush1.msra.mxu1 %v391_v33  ;;  %v263_v49 = vld [vmem:[%s2550_s5 + $0x210] sm:$0xff]  ;;  %v229_v50 = vld [vmem:[%s2550_s5 + $0x100] sm:$0xff]  ;;  %v232_v51 = vld [vmem:[%s2550_s5 + $0x118] sm:$0xff] }
  0x29   : > { %766 = vmatprep.subr.mxu0 %v358_v32  ;;  %837 = vmatprep.subr.mxu1 %v360_v35  ;;  %v198_v52 = vld [vmem:[%s2550_s5 + $0x8] sm:$0xff]  ;;  %v231_v53 = vld [vmem:[%s2550_s5 + $0x110] sm:$0xff]  ;;  %v197_v54 = vld [vmem:[%s2550_s5] sm:$0xff] }
  0x2a   : > { %767 = vmatpush1.msra.mxu0 %v357_v34  ;;  %838 = vmatpush1.msra.mxu1 %v359_v37  ;;  %v200_v55 = vld [vmem:[%s2550_s5 + $0x18] sm:$0xff]  ;;  %v618_v57 = vld [vmem:[%s2550_s5 + $0xd28] sm:$0xf]  ;;  %v199_v58 = vld [vmem:[%s2550_s5 + $0x10] sm:$0xff] }
  0x2b   : > { %768 = vmatprep.subr.mxu0 %v326_v36  ;;  %839 = vmatprep.subr.mxu1 %v328_v39  ;;  %v617_v59 = vld [vmem:[%s2550_s5 + $0xd20] sm:$0xf]  ;;  %v586_v60 = vld [vmem:[%s2550_s5 + $0xc28] sm:$0xff]  ;;  %v620_v61 = vld [vmem:[%s2550_s5 + $0xd38] sm:$0xf] }
  0x2c   : > { %769 = vmatpush1.msra.mxu0 %v325_v38  ;;  %840 = vmatpush1.msra.mxu1 %v327_v41  ;;  %v585_v62 = vld [vmem:[%s2550_s5 + $0xc20] sm:$0xff]  ;;  %v619_v63 = vld [vmem:[%s2550_s5 + $0xd30] sm:$0xf]  ;;  %v554_v1 = vld [vmem:[%s2550_s5 + $0xb28] sm:$0xff] }
  0x2d   : > { %770 = vmatprep.subr.mxu0 %v294_v40  ;;  %841 = vmatprep.subr.mxu1 %v296_v43  ;;  %v588_v2 = vld [vmem:[%s2550_s5 + $0xc38] sm:$0xff]  ;;  %v553_v3 = vld [vmem:[%s2550_s5 + $0xb20] sm:$0xff]  ;;  %v587_v4 = vld [vmem:[%s2550_s5 + $0xc30] sm:$0xff] }
  0x2e   : > { %771 = vmatpush1.msra.mxu0 %v293_v42  ;;  %842 = vmatpush1.msra.mxu1 %v295_v45  ;;  %v522_v5 = vld [vmem:[%s2550_s5 + $0xa28] sm:$0xff]  ;;  %v556_v6 = vld [vmem:[%s2550_s5 + $0xb38] sm:$0xff]  ;;  %v521_v7 = vld [vmem:[%s2550_s5 + $0xa20] sm:$0xff] }
  0x2f   : > { %772 = vmatprep.subr.mxu0 %v262_v44  ;;  %843 = vmatprep.subr.mxu1 %v264_v47  ;;  %v555_v8 = vld [vmem:[%s2550_s5 + $0xb30] sm:$0xff]  ;;  %v490_v9 = vld [vmem:[%s2550_s5 + $0x928] sm:$0xff]  ;;  %v524_v10 = vld [vmem:[%s2550_s5 + $0xa38] sm:$0xff] }
  0x30   : > { %773 = vmatpush1.msra.mxu0 %v261_v46  ;;  %844 = vmatpush1.msra.mxu1 %v263_v49  ;;  %v489_v11 = vld [vmem:[%s2550_s5 + $0x920] sm:$0xff]  ;;  %v523_v12 = vld [vmem:[%s2550_s5 + $0xa30] sm:$0xff]  ;;  %v458_v13 = vld [vmem:[%s2550_s5 + $0x828] sm:$0xff] }
  0x31   : > { %774 = vmatprep.subr.mxu0 %v230_v48  ;;  %845 = vmatprep.subr.mxu1 %v232_v51  ;;  %v492_v14 = vld [vmem:[%s2550_s5 + $0x938] sm:$0xff]  ;;  %v457_v15 = vld [vmem:[%s2550_s5 + $0x820] sm:$0xff]  ;;  %v491_v16 = vld [vmem:[%s2550_s5 + $0x930] sm:$0xff] }
  0x32   : > { %775 = vmatpush1.msra.mxu0 %v229_v50  ;;  %846 = vmatpush1.msra.mxu1 %v231_v53  ;;  %v426_v17 = vld [vmem:[%s2550_s5 + $0x728] sm:$0xff]  ;;  %v460_v18 = vld [vmem:[%s2550_s5 + $0x838] sm:$0xff]  ;;  %v425_v19 = vld [vmem:[%s2550_s5 + $0x720] sm:$0xff] }
  0x33   : > { %776 = vmatprep.subr.mxu0 %v198_v52  ;;  %847 = vmatprep.subr.mxu1 %v200_v55  ;;  %v459_v20 = vld [vmem:[%s2550_s5 + $0x830] sm:$0xff]  ;;  %v394_v21 = vld [vmem:[%s2550_s5 + $0x628] sm:$0xff]  ;;  %v428_v22 = vld [vmem:[%s2550_s5 + $0x738] sm:$0xff] }
  0x34   : > { %777 = vmatpush1.msra.mxu0 %v197_v54  ;;  %848 = vmatpush1.msra.mxu1 %v199_v58  ;;  %v393_v23 = vld [vmem:[%s2550_s5 + $0x620] sm:$0xff]  ;;  %v427_v24 = vld [vmem:[%s2550_s5 + $0x730] sm:$0xff]  ;;  %v362_v25 = vld [vmem:[%s2550_s5 + $0x528] sm:$0xff] }
  0x35   : > { %2292 = vmatmul.mubr.msk.f32.vlgmr.msra.gmra.mxu0 %vm645_vm1, %v2614_v56  ;;  %2296 = vmatprep.subr.msk.mxu0 %vm649_vm0, %v618_v57  ;;  %v396_v26 = vld [vmem:[%s2550_s5 + $0x638] sm:$0xff]  ;;  %v361_v27 = vld [vmem:[%s2550_s5 + $0x520] sm:$0xff]  ;;  %v395_v28 = vld [vmem:[%s2550_s5 + $0x630] sm:$0xff] }
  0x36   : > { %2297 = vmatpush1.msk.msra.mxu0 %vm649_vm0, %v617_v59  ;;  %2299 = vmatprep.subr.msk.mxu1 %vm649_vm0, %v620_v61  ;;  %v330_v29 = vld [vmem:[%s2550_s5 + $0x428] sm:$0xff]  ;;  %v364_v30 = vld [vmem:[%s2550_s5 + $0x538] sm:$0xff]  ;;  %v329_v31 = vld [vmem:[%s2550_s5 + $0x420] sm:$0xff] }
  0x37   : > { %894 = vmatprep.subr.mxu0 %v586_v60  ;;  %2295 = vmatmul.mubr.msk.f32.vlgmr.msra.gmra.mxu1 %vm645_vm1, %v2614_v56  ;;  %v363_v32 = vld [vmem:[%s2550_s5 + $0x530] sm:$0xff]  ;;  %v298_v33 = vld [vmem:[%s2550_s5 + $0x328] sm:$0xff]  ;;  %v332_v34 = vld [vmem:[%s2550_s5 + $0x438] sm:$0xff] }
  0x38   : > { %895 = vmatpush1.msra.mxu0 %v585_v62  ;;  %2300 = vmatpush1.msk.msra.mxu1 %vm649_vm0, %v619_v63  ;;  %v297_v35 = vld [vmem:[%s2550_s5 + $0x320] sm:$0xff]  ;;  %v331_v36 = vld [vmem:[%s2550_s5 + $0x430] sm:$0xff]  ;;  %v266_v37 = vld [vmem:[%s2550_s5 + $0x228] sm:$0xff] }
  0x39   : > { %896 = vmatprep.subr.mxu0 %v554_v1  ;;  %965 = vmatprep.subr.mxu1 %v588_v2  ;;  %v300_v38 = vld [vmem:[%s2550_s5 + $0x338] sm:$0xff]  ;;  %v265_v39 = vld [vmem:[%s2550_s5 + $0x220] sm:$0xff]  ;;  %v299_v40 = vld [vmem:[%s2550_s5 + $0x330] sm:$0xff] }
  0x3a   : > { %897 = vmatpush1.msra.mxu0 %v553_v3  ;;  %966 = vmatpush1.msra.mxu1 %v587_v4  ;;  %v234_v41 = vld [vmem:[%s2550_s5 + $0x128] sm:$0xff]  ;;  %v268_v42 = vld [vmem:[%s2550_s5 + $0x238] sm:$0xff]  ;;  %v233_v43 = vld [vmem:[%s2550_s5 + $0x120] sm:$0xff] }
  0x3b   : > { %898 = vmatprep.subr.mxu0 %v522_v5  ;;  %967 = vmatprep.subr.mxu1 %v556_v6  ;;  %v267_v44 = vld [vmem:[%s2550_s5 + $0x230] sm:$0xff]  ;;  %v202_v45 = vld [vmem:[%s2550_s5 + $0x28] sm:$0xff]  ;;  %v236_v46 = vld [vmem:[%s2550_s5 + $0x138] sm:$0xff] }
  0x3c   : > { %899 = vmatpush1.msra.mxu0 %v521_v7  ;;  %968 = vmatpush1.msra.mxu1 %v555_v8  ;;  %v201_v47 = vld [vmem:[%s2550_s5 + $0x20] sm:$0xff]  ;;  %v235_v48 = vld [vmem:[%s2550_s5 + $0x130] sm:$0xff]  ;;  %v204_v49 = vld [vmem:[%s2550_s5 + $0x38] sm:$0xff] }
  0x3d   : > { %900 = vmatprep.subr.mxu0 %v490_v9  ;;  %969 = vmatprep.subr.mxu1 %v524_v10  ;;  %v622_v50 = vld [vmem:[%s2550_s5 + $0xd48] sm:$0xf]  ;;  %v203_v51 = vld [vmem:[%s2550_s5 + $0x30] sm:$0xff]  ;;  %v621_v52 = vld [vmem:[%s2550_s5 + $0xd40] sm:$0xf] }
  0x3e   : > { %901 = vmatpush1.msra.mxu0 %v489_v11  ;;  %970 = vmatpush1.msra.mxu1 %v523_v12  ;;  %v590_v53 = vld [vmem:[%s2550_s5 + $0xc48] sm:$0xff]  ;;  %v624_v54 = vld [vmem:[%s2550_s5 + $0xd58] sm:$0xf]  ;;  %v589_v55 = vld [vmem:[%s2550_s5 + $0xc40] sm:$0xff] }
  0x3f   : > { %902 = vmatprep.subr.mxu0 %v458_v13  ;;  %971 = vmatprep.subr.mxu1 %v492_v14  ;;  %v623_v57 = vld [vmem:[%s2550_s5 + $0xd50] sm:$0xf]  ;;  %v558_v58 = vld [vmem:[%s2550_s5 + $0xb48] sm:$0xff]  ;;  %v592_v59 = vld [vmem:[%s2550_s5 + $0xc58] sm:$0xff] }
  0x40   : > { %903 = vmatpush1.msra.mxu0 %v457_v15  ;;  %972 = vmatpush1.msra.mxu1 %v491_v16  ;;  %v557_v60 = vld [vmem:[%s2550_s5 + $0xb40] sm:$0xff]  ;;  %v591_v61 = vld [vmem:[%s2550_s5 + $0xc50] sm:$0xff]  ;;  %v526_v62 = vld [vmem:[%s2550_s5 + $0xa48] sm:$0xff] }
  0x41   : > { %904 = vmatprep.subr.mxu0 %v426_v17  ;;  %973 = vmatprep.subr.mxu1 %v460_v18  ;;  %v560_v63 = vld [vmem:[%s2550_s5 + $0xb58] sm:$0xff]  ;;  %v525_v1 = vld [vmem:[%s2550_s5 + $0xa40] sm:$0xff]  ;;  %v559_v2 = vld [vmem:[%s2550_s5 + $0xb50] sm:$0xff] }
  0x42   : > { %905 = vmatpush1.msra.mxu0 %v425_v19  ;;  %974 = vmatpush1.msra.mxu1 %v459_v20  ;;  %v494_v3 = vld [vmem:[%s2550_s5 + $0x948] sm:$0xff]  ;;  %v528_v4 = vld [vmem:[%s2550_s5 + $0xa58] sm:$0xff]  ;;  %v493_v5 = vld [vmem:[%s2550_s5 + $0x940] sm:$0xff] }
  0x43   : > { %906 = vmatprep.subr.mxu0 %v394_v21  ;;  %975 = vmatprep.subr.mxu1 %v428_v22  ;;  %v527_v6 = vld [vmem:[%s2550_s5 + $0xa50] sm:$0xff]  ;;  %v462_v7 = vld [vmem:[%s2550_s5 + $0x848] sm:$0xff]  ;;  %v496_v8 = vld [vmem:[%s2550_s5 + $0x958] sm:$0xff] }
  0x44   : > { %907 = vmatpush1.msra.mxu0 %v393_v23  ;;  %976 = vmatpush1.msra.mxu1 %v427_v24  ;;  %v461_v9 = vld [vmem:[%s2550_s5 + $0x840] sm:$0xff]  ;;  %v495_v10 = vld [vmem:[%s2550_s5 + $0x950] sm:$0xff]  ;;  %v430_v11 = vld [vmem:[%s2550_s5 + $0x748] sm:$0xff] }
  0x45   : > { %908 = vmatprep.subr.mxu0 %v362_v25  ;;  %977 = vmatprep.subr.mxu1 %v396_v26  ;;  %v464_v12 = vld [vmem:[%s2550_s5 + $0x858] sm:$0xff]  ;;  %v429_v13 = vld [vmem:[%s2550_s5 + $0x740] sm:$0xff]  ;;  %v463_v14 = vld [vmem:[%s2550_s5 + $0x850] sm:$0xff] }
  0x46   : > { %909 = vmatpush1.msra.mxu0 %v361_v27  ;;  %978 = vmatpush1.msra.mxu1 %v395_v28  ;;  %v398_v15 = vld [vmem:[%s2550_s5 + $0x648] sm:$0xff]  ;;  %v432_v16 = vld [vmem:[%s2550_s5 + $0x758] sm:$0xff]  ;;  %v397_v17 = vld [vmem:[%s2550_s5 + $0x640] sm:$0xff] }
  0x47   : > { %910 = vmatprep.subr.mxu0 %v330_v29  ;;  %979 = vmatprep.subr.mxu1 %v364_v30  ;;  %v431_v18 = vld [vmem:[%s2550_s5 + $0x750] sm:$0xff]  ;;  %v366_v19 = vld [vmem:[%s2550_s5 + $0x548] sm:$0xff]  ;;  %v400_v20 = vld [vmem:[%s2550_s5 + $0x658] sm:$0xff] }
  0x48   : > { %911 = vmatpush1.msra.mxu0 %v329_v31  ;;  %980 = vmatpush1.msra.mxu1 %v363_v32  ;;  %v365_v21 = vld [vmem:[%s2550_s5 + $0x540] sm:$0xff]  ;;  %v399_v22 = vld [vmem:[%s2550_s5 + $0x650] sm:$0xff]  ;;  %v334_v23 = vld [vmem:[%s2550_s5 + $0x448] sm:$0xff] }
  0x49   : > { %912 = vmatprep.subr.mxu0 %v298_v33  ;;  %981 = vmatprep.subr.mxu1 %v332_v34  ;;  %v368_v24 = vld [vmem:[%s2550_s5 + $0x558] sm:$0xff]  ;;  %v333_v25 = vld [vmem:[%s2550_s5 + $0x440] sm:$0xff]  ;;  %v367_v26 = vld [vmem:[%s2550_s5 + $0x550] sm:$0xff] }
  0x4a   : > { %913 = vmatpush1.msra.mxu0 %v297_v35  ;;  %982 = vmatpush1.msra.mxu1 %v331_v36  ;;  %v302_v27 = vld [vmem:[%s2550_s5 + $0x348] sm:$0xff]  ;;  %v336_v28 = vld [vmem:[%s2550_s5 + $0x458] sm:$0xff]  ;;  %v301_v29 = vld [vmem:[%s2550_s5 + $0x340] sm:$0xff] }
  0x4b   : > { %914 = vmatprep.subr.mxu0 %v266_v37  ;;  %983 = vmatprep.subr.mxu1 %v300_v38  ;;  %v335_v30 = vld [vmem:[%s2550_s5 + $0x450] sm:$0xff]  ;;  %v270_v31 = vld [vmem:[%s2550_s5 + $0x248] sm:$0xff]  ;;  %v304_v32 = vld [vmem:[%s2550_s5 + $0x358] sm:$0xff] }
  0x4c   : > { %915 = vmatpush1.msra.mxu0 %v265_v39  ;;  %984 = vmatpush1.msra.mxu1 %v299_v40  ;;  %v269_v33 = vld [vmem:[%s2550_s5 + $0x240] sm:$0xff]  ;;  %v303_v34 = vld [vmem:[%s2550_s5 + $0x350] sm:$0xff]  ;;  %v238_v35 = vld [vmem:[%s2550_s5 + $0x148] sm:$0xff] }
  0x4d   : > { %916 = vmatprep.subr.mxu0 %v234_v41  ;;  %985 = vmatprep.subr.mxu1 %v268_v42  ;;  %v272_v36 = vld [vmem:[%s2550_s5 + $0x258] sm:$0xff]  ;;  %v237_v37 = vld [vmem:[%s2550_s5 + $0x140] sm:$0xff]  ;;  %v271_v38 = vld [vmem:[%s2550_s5 + $0x250] sm:$0xff] }
  0x4e   : > { %917 = vmatpush1.msra.mxu0 %v233_v43  ;;  %986 = vmatpush1.msra.mxu1 %v267_v44  ;;  %v206_v39 = vld [vmem:[%s2550_s5 + $0x48] sm:$0xff]  ;;  %v240_v40 = vld [vmem:[%s2550_s5 + $0x158] sm:$0xff]  ;;  %v205_v41 = vld [vmem:[%s2550_s5 + $0x40] sm:$0xff] }
  0x4f   : > { %918 = vmatprep.subr.mxu0 %v202_v45  ;;  %987 = vmatprep.subr.mxu1 %v236_v46  ;;  %v239_v42 = vld [vmem:[%s2550_s5 + $0x150] sm:$0xff]  ;;  %v208_v43 = vld [vmem:[%s2550_s5 + $0x58] sm:$0xff]  ;;  %v626_v44 = vld [vmem:[%s2550_s5 + $0xd68] sm:$0xf] }
  0x50   : > { %919 = vmatpush1.msra.mxu0 %v201_v47  ;;  %952 = vmatprep.mubr.f32.mxu0 %v2467_v0  ;;  %v207_v45 = vld [vmem:[%s2550_s5 + $0x50] sm:$0xff]  ;;  %v625_v46 = vld [vmem:[%s2550_s5 + $0xd60] sm:$0xf]  ;;  %v594_v47 = vld [vmem:[%s2550_s5 + $0xc68] sm:$0xff] }
  0x51   : > { %988 = vmatpush1.msra.mxu1 %v235_v48  ;;  %2298 = vmatmul.mubr.msk.f32.vlgmr.msra.gmra.mxu0 %vm645_vm1, %v2614_v56  ;;  %v628_v48 = vld [vmem:[%s2550_s5 + $0xd78] sm:$0xf] }
  0x52   : > { %989 = vmatprep.subr.mxu1 %v204_v49  ;;  %2302 = vmatprep.subr.msk.mxu0 %vm649_vm0, %v622_v50  ;;  %v593_v49 = vld [vmem:[%s2550_s5 + $0xc60] sm:$0xff]  ;;  %v627_v50 = vld [vmem:[%s2550_s5 + $0xd70] sm:$0xf] }
  0x53   : > { %990 = vmatpush1.msra.mxu1 %v203_v51  ;;  %2303 = vmatpush1.msk.msra.mxu0 %vm649_vm0, %v621_v52  ;;  %v562_v51 = vld [vmem:[%s2550_s5 + $0xb68] sm:$0xff]  ;;  %v596_v52 = vld [vmem:[%s2550_s5 + $0xc78] sm:$0xff] }
  0x54   : > { %1023 = vmatprep.mubr.f32.mxu1 %v2467_v0  ;;  %1036 = vmatprep.subr.mxu0 %v590_v53  ;;  %v561_v53 = vld [vmem:[%s2550_s5 + $0xb60] sm:$0xff] }
  0x55   : > { %2305 = vmatprep.subr.msk.mxu1 %vm649_vm0, %v624_v54  ;;  %2301 = vmatmul.mubr.msk.f32.vlgmr.msra.gmra.mxu1 %vm645_vm1, %v2614_v56  ;;  %v595_v54 = vld [vmem:[%s2550_s5 + $0xc70] sm:$0xff] }
  0x56   : > { %1037 = vmatpush1.msra.mxu0 %v589_v55  ;;  %2306 = vmatpush1.msk.msra.mxu1 %vm649_vm0, %v623_v57  ;;  %v530_v55 = vld [vmem:[%s2550_s5 + $0xa68] sm:$0xff]  ;;  %v564_v57 = vld [vmem:[%s2550_s5 + $0xb78] sm:$0xff] }
  0x57   : > { %1038 = vmatprep.subr.mxu0 %v558_v58  ;;  %1107 = vmatprep.subr.mxu1 %v592_v59  ;;  %v529_v58 = vld [vmem:[%s2550_s5 + $0xa60] sm:$0xff]  ;;  %v563_v59 = vld [vmem:[%s2550_s5 + $0xb70] sm:$0xff] }
  0x58   : > { %1039 = vmatpush1.msra.mxu0 %v557_v60  ;;  %1108 = vmatpush1.msra.mxu1 %v591_v61  ;;  %v498_v60 = vld [vmem:[%s2550_s5 + $0x968] sm:$0xff]  ;;  %v532_v61 = vld [vmem:[%s2550_s5 + $0xa78] sm:$0xff] }
  0x59   : > { %1040 = vmatprep.subr.mxu0 %v526_v62  ;;  %1109 = vmatprep.subr.mxu1 %v560_v63  ;;  %v497_v62 = vld [vmem:[%s2550_s5 + $0x960] sm:$0xff]  ;;  %v531_v63 = vld [vmem:[%s2550_s5 + $0xa70] sm:$0xff] }
  0x5a   : > { %1041 = vmatpush1.msra.mxu0 %v525_v1  ;;  %1110 = vmatpush1.msra.mxu1 %v559_v2  ;;  %v466_v1 = vld [vmem:[%s2550_s5 + $0x868] sm:$0xff]  ;;  %v500_v2 = vld [vmem:[%s2550_s5 + $0x978] sm:$0xff] }
  0x5b   : > { %1042 = vmatprep.subr.mxu0 %v494_v3  ;;  %1111 = vmatprep.subr.mxu1 %v528_v4  ;;  %v465_v3 = vld [vmem:[%s2550_s5 + $0x860] sm:$0xff]  ;;  %v499_v4 = vld [vmem:[%s2550_s5 + $0x970] sm:$0xff] }
  0x5c   : > { %1043 = vmatpush1.msra.mxu0 %v493_v5  ;;  %1112 = vmatpush1.msra.mxu1 %v527_v6  ;;  %v434_v5 = vld [vmem:[%s2550_s5 + $0x768] sm:$0xff]  ;;  %v468_v6 = vld [vmem:[%s2550_s5 + $0x878] sm:$0xff] }
  0x5d   : > { %1044 = vmatprep.subr.mxu0 %v462_v7  ;;  %1113 = vmatprep.subr.mxu1 %v496_v8  ;;  %v433_v7 = vld [vmem:[%s2550_s5 + $0x760] sm:$0xff]  ;;  %v467_v8 = vld [vmem:[%s2550_s5 + $0x870] sm:$0xff] }
  0x5e   : > { %1045 = vmatpush1.msra.mxu0 %v461_v9  ;;  %1114 = vmatpush1.msra.mxu1 %v495_v10  ;;  %v402_v9 = vld [vmem:[%s2550_s5 + $0x668] sm:$0xff]  ;;  %v436_v10 = vld [vmem:[%s2550_s5 + $0x778] sm:$0xff] }
  0x5f   : > { %1046 = vmatprep.subr.mxu0 %v430_v11  ;;  %1115 = vmatprep.subr.mxu1 %v464_v12  ;;  %v401_v11 = vld [vmem:[%s2550_s5 + $0x660] sm:$0xff]  ;;  %v435_v12 = vld [vmem:[%s2550_s5 + $0x770] sm:$0xff] }
  0x60   : > { %1047 = vmatpush1.msra.mxu0 %v429_v13  ;;  %1116 = vmatpush1.msra.mxu1 %v463_v14  ;;  %v370_v13 = vld [vmem:[%s2550_s5 + $0x568] sm:$0xff]  ;;  %v404_v14 = vld [vmem:[%s2550_s5 + $0x678] sm:$0xff] }
  0x61   : > { %1048 = vmatprep.subr.mxu0 %v398_v15  ;;  %1117 = vmatprep.subr.mxu1 %v432_v16  ;;  %v369_v15 = vld [vmem:[%s2550_s5 + $0x560] sm:$0xff]  ;;  %v403_v16 = vld [vmem:[%s2550_s5 + $0x670] sm:$0xff] }
  0x62   : > { %1049 = vmatpush1.msra.mxu0 %v397_v17  ;;  %1118 = vmatpush1.msra.mxu1 %v431_v18  ;;  %v338_v17 = vld [vmem:[%s2550_s5 + $0x468] sm:$0xff]  ;;  %v372_v18 = vld [vmem:[%s2550_s5 + $0x578] sm:$0xff] }
  0x63   : > { %1050 = vmatprep.subr.mxu0 %v366_v19  ;;  %1119 = vmatprep.subr.mxu1 %v400_v20  ;;  %v337_v19 = vld [vmem:[%s2550_s5 + $0x460] sm:$0xff]  ;;  %v371_v20 = vld [vmem:[%s2550_s5 + $0x570] sm:$0xff] }
  0x64   : > { %1051 = vmatpush1.msra.mxu0 %v365_v21  ;;  %1120 = vmatpush1.msra.mxu1 %v399_v22  ;;  %v306_v21 = vld [vmem:[%s2550_s5 + $0x368] sm:$0xff]  ;;  %v340_v22 = vld [vmem:[%s2550_s5 + $0x478] sm:$0xff] }
  0x65   : > { %1052 = vmatprep.subr.mxu0 %v334_v23  ;;  %1121 = vmatprep.subr.mxu1 %v368_v24  ;;  %v305_v23 = vld [vmem:[%s2550_s5 + $0x360] sm:$0xff]  ;;  %v339_v24 = vld [vmem:[%s2550_s5 + $0x470] sm:$0xff] }
  0x66   : > { %1053 = vmatpush1.msra.mxu0 %v333_v25  ;;  %1122 = vmatpush1.msra.mxu1 %v367_v26  ;;  %v274_v25 = vld [vmem:[%s2550_s5 + $0x268] sm:$0xff]  ;;  %v308_v26 = vld [vmem:[%s2550_s5 + $0x378] sm:$0xff] }
  0x67   : > { %1054 = vmatprep.subr.mxu0 %v302_v27  ;;  %1123 = vmatprep.subr.mxu1 %v336_v28  ;;  %v273_v27 = vld [vmem:[%s2550_s5 + $0x260] sm:$0xff]  ;;  %v307_v28 = vld [vmem:[%s2550_s5 + $0x370] sm:$0xff] }
  0x68   : > { %1055 = vmatpush1.msra.mxu0 %v301_v29  ;;  %1124 = vmatpush1.msra.mxu1 %v335_v30  ;;  %v242_v29 = vld [vmem:[%s2550_s5 + $0x168] sm:$0xff]  ;;  %v276_v30 = vld [vmem:[%s2550_s5 + $0x278] sm:$0xff] }
  0x69   : > { %1056 = vmatprep.subr.mxu0 %v270_v31  ;;  %1125 = vmatprep.subr.mxu1 %v304_v32  ;;  %v241_v31 = vld [vmem:[%s2550_s5 + $0x160] sm:$0xff]  ;;  %v275_v32 = vld [vmem:[%s2550_s5 + $0x270] sm:$0xff] }
  0x6a   : > { %1057 = vmatpush1.msra.mxu0 %v269_v33  ;;  %1126 = vmatpush1.msra.mxu1 %v303_v34  ;;  %v210_v33 = vld [vmem:[%s2550_s5 + $0x68] sm:$0xff]  ;;  %v244_v34 = vld [vmem:[%s2550_s5 + $0x178] sm:$0xff] }
  0x6b   : > { %1058 = vmatprep.subr.mxu0 %v238_v35  ;;  %1127 = vmatprep.subr.mxu1 %v272_v36  ;;  %v209_v35 = vld [vmem:[%s2550_s5 + $0x60] sm:$0xff]  ;;  %v243_v36 = vld [vmem:[%s2550_s5 + $0x170] sm:$0xff] }
  0x6c   : > { %1059 = vmatpush1.msra.mxu0 %v237_v37  ;;  %1128 = vmatpush1.msra.mxu1 %v271_v38  ;;  %v212_v37 = vld [vmem:[%s2550_s5 + $0x78] sm:$0xff]  ;;  %v630_v38 = vld [vmem:[%s2550_s5 + $0xd88] sm:$0xf] }
  0x6d   : > { %1060 = vmatprep.subr.mxu0 %v206_v39  ;;  %1129 = vmatprep.subr.mxu1 %v240_v40  ;;  %v211_v39 = vld [vmem:[%s2550_s5 + $0x70] sm:$0xff]  ;;  %v629_v40 = vld [vmem:[%s2550_s5 + $0xd80] sm:$0xf] }
  0x6e   : > { %1061 = vmatpush1.msra.mxu0 %v205_v41  ;;  %1094 = vmatprep.mubr.f32.mxu0 %v2467_v0  ;;  %v598_v41 = vld [vmem:[%s2550_s5 + $0xc88] sm:$0xff] }
  0x6f   : > { %1130 = vmatpush1.msra.mxu1 %v239_v42  ;;  %2304 = vmatmul.mubr.msk.f32.vlgmr.msra.gmra.mxu0 %vm645_vm1, %v2614_v56  ;;  %v632_v42 = vld [vmem:[%s2550_s5 + $0xd98] sm:$0xf] }
  0x70   : > { %1131 = vmatprep.subr.mxu1 %v208_v43  ;;  %2308 = vmatprep.subr.msk.mxu0 %vm649_vm0, %v626_v44  ;;  %v597_v43 = vld [vmem:[%s2550_s5 + $0xc80] sm:$0xff]  ;;  %v631_v44 = vld [vmem:[%s2550_s5 + $0xd90] sm:$0xf] }
  0x71   : > { %1132 = vmatpush1.msra.mxu1 %v207_v45  ;;  %2309 = vmatpush1.msk.msra.mxu0 %vm649_vm0, %v625_v46  ;;  %v566_v45 = vld [vmem:[%s2550_s5 + $0xb88] sm:$0xff]  ;;  %v600_v46 = vld [vmem:[%s2550_s5 + $0xc98] sm:$0xff] }
  0x72   : > { %1165 = vmatprep.mubr.f32.mxu1 %v2467_v0  ;;  %1178 = vmatprep.subr.mxu0 %v594_v47  ;;  %v565_v47 = vld [vmem:[%s2550_s5 + $0xb80] sm:$0xff] }
  0x73   : > { %2311 = vmatprep.subr.msk.mxu1 %vm649_vm0, %v628_v48  ;;  %2307 = vmatmul.mubr.msk.f32.vlgmr.msra.gmra.mxu1 %vm645_vm1, %v2614_v56  ;;  %v599_v48 = vld [vmem:[%s2550_s5 + $0xc90] sm:$0xff] }
  0x74   : > { %1179 = vmatpush1.msra.mxu0 %v593_v49  ;;  %2312 = vmatpush1.msk.msra.mxu1 %vm649_vm0, %v627_v50  ;;  %v534_v49 = vld [vmem:[%s2550_s5 + $0xa88] sm:$0xff]  ;;  %v568_v50 = vld [vmem:[%s2550_s5 + $0xb98] sm:$0xff] }
  0x75   : > { %1180 = vmatprep.subr.mxu0 %v562_v51  ;;  %1249 = vmatprep.subr.mxu1 %v596_v52  ;;  %v533_v51 = vld [vmem:[%s2550_s5 + $0xa80] sm:$0xff]  ;;  %v567_v52 = vld [vmem:[%s2550_s5 + $0xb90] sm:$0xff] }
  0x76   : > { %1181 = vmatpush1.msra.mxu0 %v561_v53  ;;  %1250 = vmatpush1.msra.mxu1 %v595_v54  ;;  %v502_v53 = vld [vmem:[%s2550_s5 + $0x988] sm:$0xff]  ;;  %v536_v54 = vld [vmem:[%s2550_s5 + $0xa98] sm:$0xff] }
  0x77   : > { %1182 = vmatprep.subr.mxu0 %v530_v55  ;;  %1251 = vmatprep.subr.mxu1 %v564_v57  ;;  %v501_v55 = vld [vmem:[%s2550_s5 + $0x980] sm:$0xff]  ;;  %v535_v57 = vld [vmem:[%s2550_s5 + $0xa90] sm:$0xff] }
  0x78   : > { %1183 = vmatpush1.msra.mxu0 %v529_v58  ;;  %1252 = vmatpush1.msra.mxu1 %v563_v59  ;;  %v470_v58 = vld [vmem:[%s2550_s5 + $0x888] sm:$0xff]  ;;  %v504_v59 = vld [vmem:[%s2550_s5 + $0x998] sm:$0xff] }
  0x79   : > { %1184 = vmatprep.subr.mxu0 %v498_v60  ;;  %1253 = vmatprep.subr.mxu1 %v532_v61  ;;  %v469_v60 = vld [vmem:[%s2550_s5 + $0x880] sm:$0xff]  ;;  %v503_v61 = vld [vmem:[%s2550_s5 + $0x990] sm:$0xff] }
  0x7a   : > { %1185 = vmatpush1.msra.mxu0 %v497_v62  ;;  %1254 = vmatpush1.msra.mxu1 %v531_v63  ;;  %v438_v62 = vld [vmem:[%s2550_s5 + $0x788] sm:$0xff]  ;;  %v472_v63 = vld [vmem:[%s2550_s5 + $0x898] sm:$0xff] }
  0x7b   : > { %1186 = vmatprep.subr.mxu0 %v466_v1  ;;  %1255 = vmatprep.subr.mxu1 %v500_v2  ;;  %v437_v1 = vld [vmem:[%s2550_s5 + $0x780] sm:$0xff]  ;;  %v471_v2 = vld [vmem:[%s2550_s5 + $0x890] sm:$0xff] }
  0x7c   : > { %1187 = vmatpush1.msra.mxu0 %v465_v3  ;;  %1256 = vmatpush1.msra.mxu1 %v499_v4  ;;  %v406_v3 = vld [vmem:[%s2550_s5 + $0x688] sm:$0xff]  ;;  %v440_v4 = vld [vmem:[%s2550_s5 + $0x798] sm:$0xff] }
  0x7d   : > { %1188 = vmatprep.subr.mxu0 %v434_v5  ;;  %1257 = vmatprep.subr.mxu1 %v468_v6  ;;  %v405_v5 = vld [vmem:[%s2550_s5 + $0x680] sm:$0xff]  ;;  %v439_v6 = vld [vmem:[%s2550_s5 + $0x790] sm:$0xff] }
  0x7e   : > { %1189 = vmatpush1.msra.mxu0 %v433_v7  ;;  %1258 = vmatpush1.msra.mxu1 %v467_v8  ;;  %v374_v7 = vld [vmem:[%s2550_s5 + $0x588] sm:$0xff]  ;;  %v408_v8 = vld [vmem:[%s2550_s5 + $0x698] sm:$0xff] }
  0x7f   : > { %1190 = vmatprep.subr.mxu0 %v402_v9  ;;  %1259 = vmatprep.subr.mxu1 %v436_v10  ;;  %v373_v9 = vld [vmem:[%s2550_s5 + $0x580] sm:$0xff]  ;;  %v407_v10 = vld [vmem:[%s2550_s5 + $0x690] sm:$0xff] }
  0x80   : > { %1191 = vmatpush1.msra.mxu0 %v401_v11  ;;  %1260 = vmatpush1.msra.mxu1 %v435_v12  ;;  %v342_v11 = vld [vmem:[%s2550_s5 + $0x488] sm:$0xff]  ;;  %v376_v12 = vld [vmem:[%s2550_s5 + $0x598] sm:$0xff] }
  0x81   : > { %1192 = vmatprep.subr.mxu0 %v370_v13  ;;  %1261 = vmatprep.subr.mxu1 %v404_v14  ;;  %v341_v13 = vld [vmem:[%s2550_s5 + $0x480] sm:$0xff]  ;;  %v375_v14 = vld [vmem:[%s2550_s5 + $0x590] sm:$0xff] }
  0x82   : > { %1193 = vmatpush1.msra.mxu0 %v369_v15  ;;  %1262 = vmatpush1.msra.mxu1 %v403_v16  ;;  %v310_v15 = vld [vmem:[%s2550_s5 + $0x388] sm:$0xff]  ;;  %v344_v16 = vld [vmem:[%s2550_s5 + $0x498] sm:$0xff] }
  0x83   : > { %1194 = vmatprep.subr.mxu0 %v338_v17  ;;  %1263 = vmatprep.subr.mxu1 %v372_v18  ;;  %v309_v17 = vld [vmem:[%s2550_s5 + $0x380] sm:$0xff]  ;;  %v343_v18 = vld [vmem:[%s2550_s5 + $0x490] sm:$0xff] }
  0x84   : > { %1195 = vmatpush1.msra.mxu0 %v337_v19  ;;  %1264 = vmatpush1.msra.mxu1 %v371_v20  ;;  %v278_v19 = vld [vmem:[%s2550_s5 + $0x288] sm:$0xff]  ;;  %v312_v20 = vld [vmem:[%s2550_s5 + $0x398] sm:$0xff] }
  0x85   : > { %1196 = vmatprep.subr.mxu0 %v306_v21  ;;  %1265 = vmatprep.subr.mxu1 %v340_v22  ;;  %v277_v21 = vld [vmem:[%s2550_s5 + $0x280] sm:$0xff]  ;;  %v311_v22 = vld [vmem:[%s2550_s5 + $0x390] sm:$0xff] }
  0x86   : > { %1197 = vmatpush1.msra.mxu0 %v305_v23  ;;  %1266 = vmatpush1.msra.mxu1 %v339_v24  ;;  %v246_v23 = vld [vmem:[%s2550_s5 + $0x188] sm:$0xff]  ;;  %v280_v24 = vld [vmem:[%s2550_s5 + $0x298] sm:$0xff] }
  0x87   : > { %1198 = vmatprep.subr.mxu0 %v274_v25  ;;  %1267 = vmatprep.subr.mxu1 %v308_v26  ;;  %v245_v25 = vld [vmem:[%s2550_s5 + $0x180] sm:$0xff]  ;;  %v279_v26 = vld [vmem:[%s2550_s5 + $0x290] sm:$0xff] }
  0x88   : > { %1199 = vmatpush1.msra.mxu0 %v273_v27  ;;  %1268 = vmatpush1.msra.mxu1 %v307_v28  ;;  %v214_v27 = vld [vmem:[%s2550_s5 + $0x88] sm:$0xff]  ;;  %v248_v28 = vld [vmem:[%s2550_s5 + $0x198] sm:$0xff] }
  0x89   : > { %1200 = vmatprep.subr.mxu0 %v242_v29  ;;  %1269 = vmatprep.subr.mxu1 %v276_v30  ;;  %v213_v29 = vld [vmem:[%s2550_s5 + $0x80] sm:$0xff]  ;;  %v247_v30 = vld [vmem:[%s2550_s5 + $0x190] sm:$0xff] }
  0x8a   : > { %1201 = vmatpush1.msra.mxu0 %v241_v31  ;;  %1270 = vmatpush1.msra.mxu1 %v275_v32  ;;  %v216_v31 = vld [vmem:[%s2550_s5 + $0x98] sm:$0xff]  ;;  %v634_v32 = vld [vmem:[%s2550_s5 + $0xda8] sm:$0xf] }
  0x8b   : > { %1202 = vmatprep.subr.mxu0 %v210_v33  ;;  %1271 = vmatprep.subr.mxu1 %v244_v34  ;;  %v215_v33 = vld [vmem:[%s2550_s5 + $0x90] sm:$0xff]  ;;  %v633_v34 = vld [vmem:[%s2550_s5 + $0xda0] sm:$0xf] }
  0x8c   : > { %1203 = vmatpush1.msra.mxu0 %v209_v35  ;;  %1236 = vmatprep.mubr.f32.mxu0 %v2467_v0  ;;  %v602_v35 = vld [vmem:[%s2550_s5 + $0xca8] sm:$0xff] }
  0x8d   : > { %1272 = vmatpush1.msra.mxu1 %v243_v36  ;;  %2310 = vmatmul.mubr.msk.f32.vlgmr.msra.gmra.mxu0 %vm645_vm1, %v2614_v56  ;;  %v636_v36 = vld [vmem:[%s2550_s5 + $0xdb8] sm:$0xf] }
  0x8e   : > { %1273 = vmatprep.subr.mxu1 %v212_v37  ;;  %2314 = vmatprep.subr.msk.mxu0 %vm649_vm0, %v630_v38  ;;  %v601_v37 = vld [vmem:[%s2550_s5 + $0xca0] sm:$0xff]  ;;  %v635_v38 = vld [vmem:[%s2550_s5 + $0xdb0] sm:$0xf] }
  0x8f   : > { %1274 = vmatpush1.msra.mxu1 %v211_v39  ;;  %2315 = vmatpush1.msk.msra.mxu0 %vm649_vm0, %v629_v40  ;;  %v570_v39 = vld [vmem:[%s2550_s5 + $0xba8] sm:$0xff]  ;;  %v604_v40 = vld [vmem:[%s2550_s5 + $0xcb8] sm:$0xff] }
  0x90   : > { %1307 = vmatprep.mubr.f32.mxu1 %v2467_v0  ;;  %1320 = vmatprep.subr.mxu0 %v598_v41  ;;  %v569_v41 = vld [vmem:[%s2550_s5 + $0xba0] sm:$0xff] }
  0x91   : > { %2317 = vmatprep.subr.msk.mxu1 %vm649_vm0, %v632_v42  ;;  %2313 = vmatmul.mubr.msk.f32.vlgmr.msra.gmra.mxu1 %vm645_vm1, %v2614_v56  ;;  %v603_v42 = vld [vmem:[%s2550_s5 + $0xcb0] sm:$0xff] }
  0x92   : > { %1321 = vmatpush1.msra.mxu0 %v597_v43  ;;  %2318 = vmatpush1.msk.msra.mxu1 %vm649_vm0, %v631_v44  ;;  %v538_v43 = vld [vmem:[%s2550_s5 + $0xaa8] sm:$0xff]  ;;  %v572_v44 = vld [vmem:[%s2550_s5 + $0xbb8] sm:$0xff] }
  0x93   : > { %1322 = vmatprep.subr.mxu0 %v566_v45  ;;  %1391 = vmatprep.subr.mxu1 %v600_v46  ;;  %v537_v45 = vld [vmem:[%s2550_s5 + $0xaa0] sm:$0xff]  ;;  %v571_v46 = vld [vmem:[%s2550_s5 + $0xbb0] sm:$0xff] }
  0x94   : > { %1323 = vmatpush1.msra.mxu0 %v565_v47  ;;  %1392 = vmatpush1.msra.mxu1 %v599_v48  ;;  %v506_v47 = vld [vmem:[%s2550_s5 + $0x9a8] sm:$0xff]  ;;  %v505_v48 = vld [vmem:[%s2550_s5 + $0x9a0] sm:$0xff] }
  0x95   : > { %1324 = vmatprep.subr.mxu0 %v534_v49  ;;  %1393 = vmatprep.subr.mxu1 %v568_v50  ;;  %v539_v49 = vld [vmem:[%s2550_s5 + $0xab0] sm:$0xff]  ;;  %v474_v50 = vld [vmem:[%s2550_s5 + $0x8a8] sm:$0xff] }
  0x96   : > { %1325 = vmatpush1.msra.mxu0 %v533_v51  ;;  %1394 = vmatpush1.msra.mxu1 %v567_v52  ;;  %v508_v51 = vld [vmem:[%s2550_s5 + $0x9b8] sm:$0xff]  ;;  %v473_v52 = vld [vmem:[%s2550_s5 + $0x8a0] sm:$0xff] }
  0x97   : > { %1326 = vmatprep.subr.mxu0 %v502_v53  ;;  %1395 = vmatprep.subr.mxu1 %v536_v54  ;;  %v507_v53 = vld [vmem:[%s2550_s5 + $0x9b0] sm:$0xff]  ;;  %v442_v54 = vld [vmem:[%s2550_s5 + $0x7a8] sm:$0xff] }
  0x98   : > { %1327 = vmatpush1.msra.mxu0 %v501_v55  ;;  %1396 = vmatpush1.msra.mxu1 %v535_v57  ;;  %v476_v55 = vld [vmem:[%s2550_s5 + $0x8b8] sm:$0xff]  ;;  %v441_v57 = vld [vmem:[%s2550_s5 + $0x7a0] sm:$0xff] }
  0x99   : > { %1328 = vmatprep.subr.mxu0 %v470_v58  ;;  %1397 = vmatprep.subr.mxu1 %v504_v59  ;;  %v475_v58 = vld [vmem:[%s2550_s5 + $0x8b0] sm:$0xff]  ;;  %v410_v59 = vld [vmem:[%s2550_s5 + $0x6a8] sm:$0xff] }
  0x9a   : > { %1329 = vmatpush1.msra.mxu0 %v469_v60  ;;  %1398 = vmatpush1.msra.mxu1 %v503_v61  ;;  %v444_v60 = vld [vmem:[%s2550_s5 + $0x7b8] sm:$0xff]  ;;  %v409_v61 = vld [vmem:[%s2550_s5 + $0x6a0] sm:$0xff] }
  0x9b   : > { %1330 = vmatprep.subr.mxu0 %v438_v62  ;;  %1399 = vmatprep.subr.mxu1 %v472_v63  ;;  %v443_v62 = vld [vmem:[%s2550_s5 + $0x7b0] sm:$0xff]  ;;  %v378_v63 = vld [vmem:[%s2550_s5 + $0x5a8] sm:$0xff] }
  0x9c   : > { %1331 = vmatpush1.msra.mxu0 %v437_v1  ;;  %1400 = vmatpush1.msra.mxu1 %v471_v2  ;;  %v412_v1 = vld [vmem:[%s2550_s5 + $0x6b8] sm:$0xff]  ;;  %v377_v2 = vld [vmem:[%s2550_s5 + $0x5a0] sm:$0xff] }
  0x9d   : > { %1332 = vmatprep.subr.mxu0 %v406_v3  ;;  %1401 = vmatprep.subr.mxu1 %v440_v4  ;;  %v411_v3 = vld [vmem:[%s2550_s5 + $0x6b0] sm:$0xff]  ;;  %v346_v4 = vld [vmem:[%s2550_s5 + $0x4a8] sm:$0xff] }
  0x9e   : > { %1333 = vmatpush1.msra.mxu0 %v405_v5  ;;  %1402 = vmatpush1.msra.mxu1 %v439_v6  ;;  %v380_v5 = vld [vmem:[%s2550_s5 + $0x5b8] sm:$0xff]  ;;  %v345_v6 = vld [vmem:[%s2550_s5 + $0x4a0] sm:$0xff] }
  0x9f   : > { %1334 = vmatprep.subr.mxu0 %v374_v7  ;;  %1403 = vmatprep.subr.mxu1 %v408_v8  ;;  %v379_v7 = vld [vmem:[%s2550_s5 + $0x5b0] sm:$0xff]  ;;  %v314_v8 = vld [vmem:[%s2550_s5 + $0x3a8] sm:$0xff] }
  0xa0   : > { %1335 = vmatpush1.msra.mxu0 %v373_v9  ;;  %1404 = vmatpush1.msra.mxu1 %v407_v10  ;;  %v348_v9 = vld [vmem:[%s2550_s5 + $0x4b8] sm:$0xff]  ;;  %v313_v10 = vld [vmem:[%s2550_s5 + $0x3a0] sm:$0xff] }
  0xa1   : > { %1336 = vmatprep.subr.mxu0 %v342_v11  ;;  %1405 = vmatprep.subr.mxu1 %v376_v12  ;;  %v347_v11 = vld [vmem:[%s2550_s5 + $0x4b0] sm:$0xff]  ;;  %v282_v12 = vld [vmem:[%s2550_s5 + $0x2a8] sm:$0xff] }
  0xa2   : > { %1337 = vmatpush1.msra.mxu0 %v341_v13  ;;  %1406 = vmatpush1.msra.mxu1 %v375_v14  ;;  %v316_v13 = vld [vmem:[%s2550_s5 + $0x3b8] sm:$0xff]  ;;  %v281_v14 = vld [vmem:[%s2550_s5 + $0x2a0] sm:$0xff] }
  0xa3   : > { %1338 = vmatprep.subr.mxu0 %v310_v15  ;;  %1407 = vmatprep.subr.mxu1 %v344_v16  ;;  %v315_v15 = vld [vmem:[%s2550_s5 + $0x3b0] sm:$0xff]  ;;  %v250_v16 = vld [vmem:[%s2550_s5 + $0x1a8] sm:$0xff] }
  0xa4   : > { %1339 = vmatpush1.msra.mxu0 %v309_v17  ;;  %1408 = vmatpush1.msra.mxu1 %v343_v18  ;;  %v284_v17 = vld [vmem:[%s2550_s5 + $0x2b8] sm:$0xff]  ;;  %v249_v18 = vld [vmem:[%s2550_s5 + $0x1a0] sm:$0xff] }
  0xa5   : > { %1340 = vmatprep.subr.mxu0 %v278_v19  ;;  %1409 = vmatprep.subr.mxu1 %v312_v20  ;;  %v283_v19 = vld [vmem:[%s2550_s5 + $0x2b0] sm:$0xff]  ;;  %v218_v20 = vld [vmem:[%s2550_s5 + $0xa8] sm:$0xff] }
  0xa6   : > { %1341 = vmatpush1.msra.mxu0 %v277_v21  ;;  %1410 = vmatpush1.msra.mxu1 %v311_v22  ;;  %v252_v21 = vld [vmem:[%s2550_s5 + $0x1b8] sm:$0xff]  ;;  %v217_v22 = vld [vmem:[%s2550_s5 + $0xa0] sm:$0xff] }
  0xa7   : > { %1342 = vmatprep.subr.mxu0 %v246_v23  ;;  %1411 = vmatprep.subr.mxu1 %v280_v24  ;;  %v251_v23 = vld [vmem:[%s2550_s5 + $0x1b0] sm:$0xff]  ;;  %v220_v24 = vld [vmem:[%s2550_s5 + $0xb8] sm:$0xff] }
  0xa8   : > { %1343 = vmatpush1.msra.mxu0 %v245_v25  ;;  %1412 = vmatpush1.msra.mxu1 %v279_v26  ;;  %v638_v25 = vld [vmem:[%s2550_s5 + $0xdc8] sm:$0xf]  ;;  %v219_v26 = vld [vmem:[%s2550_s5 + $0xb0] sm:$0xff] }
  0xa9   : > { %1344 = vmatprep.subr.mxu0 %v214_v27  ;;  %1413 = vmatprep.subr.mxu1 %v248_v28  ;;  %v637_v27 = vld [vmem:[%s2550_s5 + $0xdc0] sm:$0xf] }
  0xaa   : > { %1345 = vmatpush1.msra.mxu0 %v213_v29  ;;  %1378 = vmatprep.mubr.f32.mxu0 %v2467_v0  ;;  %v2951_v28 = vld [vmem:[%s3429_s1] sm:$0xff]  ;;  %v606_v29 = vld [vmem:[%s2550_s5 + $0xcc8] sm:$0xff] }
  0xab   : > { %1414 = vmatpush1.msra.mxu1 %v247_v30  ;;  %2316 = vmatmul.mubr.msk.f32.vlgmr.msra.gmra.mxu0 %vm645_vm1, %v2614_v56  ;;  %v640_v30 = vld [vmem:[%s2550_s5 + $0xdd8] sm:$0xf] }
  0xac   : > { %1415 = vmatprep.subr.mxu1 %v216_v31  ;;  %2320 = vmatprep.subr.msk.mxu0 %vm649_vm0, %v634_v32  ;;  %v605_v31 = vld [vmem:[%s2550_s5 + $0xcc0] sm:$0xff]  ;;  %v639_v32 = vld [vmem:[%s2550_s5 + $0xdd0] sm:$0xf] }
  0xad   : > { %1416 = vmatpush1.msra.mxu1 %v215_v33  ;;  %2321 = vmatpush1.msk.msra.mxu0 %vm649_vm0, %v633_v34  ;;  %v574_v33 = vld [vmem:[%s2550_s5 + $0xbc8] sm:$0xff]  ;;  %v608_v34 = vld [vmem:[%s2550_s5 + $0xcd8] sm:$0xff] }
  0xae   : > { %1449 = vmatprep.mubr.f32.mxu1 %v2467_v0  ;;  %1462 = vmatprep.subr.mxu0 %v602_v35  ;;  %v573_v35 = vld [vmem:[%s2550_s5 + $0xbc0] sm:$0xff] }
  0xaf   : > { %2323 = vmatprep.subr.msk.mxu1 %vm649_vm0, %v636_v36  ;;  %2319 = vmatmul.mubr.msk.f32.vlgmr.msra.gmra.mxu1 %vm645_vm1, %v2614_v56  ;;  %v540_v56 = vld [vmem:[%s2550_s5 + $0xab8] sm:$0xff]  ;;  %v607_v36 = vld [vmem:[%s2550_s5 + $0xcd0] sm:$0xff] }
  0xb0   : > { %1463 = vmatpush1.msra.mxu0 %v601_v37  ;;  %2324 = vmatpush1.msk.msra.mxu1 %vm649_vm0, %v635_v38  ;;  %v542_v37 = vld [vmem:[%s2550_s5 + $0xac8] sm:$0xff]  ;;  %v576_v38 = vld [vmem:[%s2550_s5 + $0xbd8] sm:$0xff] }
  0xb1   : > { %1464 = vmatprep.subr.mxu0 %v570_v39  ;;  %1533 = vmatprep.subr.mxu1 %v604_v40  ;;  %v541_v39 = vld [vmem:[%s2550_s5 + $0xac0] sm:$0xff]  ;;  %v575_v40 = vld [vmem:[%s2550_s5 + $0xbd0] sm:$0xff] }
  0xb2   : > { %1465 = vmatpush1.msra.mxu0 %v569_v41  ;;  %1534 = vmatpush1.msra.mxu1 %v603_v42  ;;  %v510_v41 = vld [vmem:[%s2550_s5 + $0x9c8] sm:$0xff]  ;;  %v544_v42 = vld [vmem:[%s2550_s5 + $0xad8] sm:$0xff] }
  0xb3   : > { %1466 = vmatprep.subr.mxu0 %v538_v43  ;;  %1535 = vmatprep.subr.mxu1 %v572_v44  ;;  %v509_v43 = vld [vmem:[%s2550_s5 + $0x9c0] sm:$0xff]  ;;  %v543_v44 = vld [vmem:[%s2550_s5 + $0xad0] sm:$0xff] }
  0xb4   : > { %1467 = vmatpush1.msra.mxu0 %v537_v45  ;;  %1536 = vmatpush1.msra.mxu1 %v571_v46  ;;  %v478_v45 = vld [vmem:[%s2550_s5 + $0x8c8] sm:$0xff]  ;;  %v512_v46 = vld [vmem:[%s2550_s5 + $0x9d8] sm:$0xff] }
  0xb5   : > { %1468 = vmatprep.subr.mxu0 %v506_v47  ;;  %1537 = vmatprep.subr.mxu1 %v540_v56  ;;  %v477_v47 = vld [vmem:[%s2550_s5 + $0x8c0] sm:$0xff]  ;;  %v511_v56 = vld [vmem:[%s2550_s5 + $0x9d0] sm:$0xff] }
  0xb6   : > { %1469 = vmatpush1.msra.mxu0 %v505_v48  ;;  %1538 = vmatpush1.msra.mxu1 %v539_v49  ;;  %v446_v48 = vld [vmem:[%s2550_s5 + $0x7c8] sm:$0xff]  ;;  %v480_v49 = vld [vmem:[%s2550_s5 + $0x8d8] sm:$0xff] }
  0xb7   : > { %1470 = vmatprep.subr.mxu0 %v474_v50  ;;  %1539 = vmatprep.subr.mxu1 %v508_v51  ;;  %v445_v50 = vld [vmem:[%s2550_s5 + $0x7c0] sm:$0xff]  ;;  %v479_v51 = vld [vmem:[%s2550_s5 + $0x8d0] sm:$0xff] }
  0xb8   : > { %1471 = vmatpush1.msra.mxu0 %v473_v52  ;;  %1540 = vmatpush1.msra.mxu1 %v507_v53  ;;  %v414_v52 = vld [vmem:[%s2550_s5 + $0x6c8] sm:$0xff]  ;;  %v448_v53 = vld [vmem:[%s2550_s5 + $0x7d8] sm:$0xff] }
  0xb9   : > { %1472 = vmatprep.subr.mxu0 %v442_v54  ;;  %1541 = vmatprep.subr.mxu1 %v476_v55  ;;  %v413_v54 = vld [vmem:[%s2550_s5 + $0x6c0] sm:$0xff]  ;;  %v447_v55 = vld [vmem:[%s2550_s5 + $0x7d0] sm:$0xff] }
  0xba   : > { %1473 = vmatpush1.msra.mxu0 %v441_v57  ;;  %1542 = vmatpush1.msra.mxu1 %v475_v58  ;;  %v382_v57 = vld [vmem:[%s2550_s5 + $0x5c8] sm:$0xff]  ;;  %v416_v58 = vld [vmem:[%s2550_s5 + $0x6d8] sm:$0xff] }
  0xbb   : > { %1474 = vmatprep.subr.mxu0 %v410_v59  ;;  %1543 = vmatprep.subr.mxu1 %v444_v60  ;;  %v381_v59 = vld [vmem:[%s2550_s5 + $0x5c0] sm:$0xff]  ;;  %v415_v60 = vld [vmem:[%s2550_s5 + $0x6d0] sm:$0xff] }
  0xbc   : > { %1475 = vmatpush1.msra.mxu0 %v409_v61  ;;  %1544 = vmatpush1.msra.mxu1 %v443_v62  ;;  %v350_v61 = vld [vmem:[%s2550_s5 + $0x4c8] sm:$0xff]  ;;  %v384_v62 = vld [vmem:[%s2550_s5 + $0x5d8] sm:$0xff] }
  0xbd   : > { %1476 = vmatprep.subr.mxu0 %v378_v63  ;;  %1545 = vmatprep.subr.mxu1 %v412_v1  ;;  %v349_v63 = vld [vmem:[%s2550_s5 + $0x4c0] sm:$0xff]  ;;  %v383_v1 = vld [vmem:[%s2550_s5 + $0x5d0] sm:$0xff] }
  0xbe   : > { %1477 = vmatpush1.msra.mxu0 %v377_v2  ;;  %1546 = vmatpush1.msra.mxu1 %v411_v3  ;;  %v318_v2 = vld [vmem:[%s2550_s5 + $0x3c8] sm:$0xff]  ;;  %v352_v3 = vld [vmem:[%s2550_s5 + $0x4d8] sm:$0xff] }
  0xbf   : > { %1478 = vmatprep.subr.mxu0 %v346_v4  ;;  %1547 = vmatprep.subr.mxu1 %v380_v5  ;;  %v317_v4 = vld [vmem:[%s2550_s5 + $0x3c0] sm:$0xff]  ;;  %v351_v5 = vld [vmem:[%s2550_s5 + $0x4d0] sm:$0xff] }
  0xc0   : > { %1479 = vmatpush1.msra.mxu0 %v345_v6  ;;  %1548 = vmatpush1.msra.mxu1 %v379_v7  ;;  %v286_v6 = vld [vmem:[%s2550_s5 + $0x2c8] sm:$0xff]  ;;  %v320_v7 = vld [vmem:[%s2550_s5 + $0x3d8] sm:$0xff] }
  0xc1   : > { %1480 = vmatprep.subr.mxu0 %v314_v8  ;;  %1549 = vmatprep.subr.mxu1 %v348_v9  ;;  %v285_v8 = vld [vmem:[%s2550_s5 + $0x2c0] sm:$0xff]  ;;  %v319_v9 = vld [vmem:[%s2550_s5 + $0x3d0] sm:$0xff] }
  0xc2   : > { %1481 = vmatpush1.msra.mxu0 %v313_v10  ;;  %1550 = vmatpush1.msra.mxu1 %v347_v11  ;;  %v254_v10 = vld [vmem:[%s2550_s5 + $0x1c8] sm:$0xff]  ;;  %v288_v11 = vld [vmem:[%s2550_s5 + $0x2d8] sm:$0xff] }
  0xc3   : > { %1482 = vmatprep.subr.mxu0 %v282_v12  ;;  %1551 = vmatprep.subr.mxu1 %v316_v13  ;;  %v253_v12 = vld [vmem:[%s2550_s5 + $0x1c0] sm:$0xff]  ;;  %v287_v13 = vld [vmem:[%s2550_s5 + $0x2d0] sm:$0xff] }
  0xc4   : > { %1483 = vmatpush1.msra.mxu0 %v281_v14  ;;  %1552 = vmatpush1.msra.mxu1 %v315_v15  ;;  %v222_v14 = vld [vmem:[%s2550_s5 + $0xc8] sm:$0xff]  ;;  %v256_v15 = vld [vmem:[%s2550_s5 + $0x1d8] sm:$0xff] }
  0xc5   : > { %1484 = vmatprep.subr.mxu0 %v250_v16  ;;  %1553 = vmatprep.subr.mxu1 %v284_v17  ;;  %v221_v16 = vld [vmem:[%s2550_s5 + $0xc0] sm:$0xff]  ;;  %v255_v17 = vld [vmem:[%s2550_s5 + $0x1d0] sm:$0xff] }
  0xc6   : > { %1485 = vmatpush1.msra.mxu0 %v249_v18  ;;  %1554 = vmatpush1.msra.mxu1 %v283_v19  ;;  %v224_v18 = vld [vmem:[%s2550_s5 + $0xd8] sm:$0xff]  ;;  %v642_v19 = vld [vmem:[%s2550_s5 + $0xde8] sm:$0xf] }
  0xc7   : > { %1486 = vmatprep.subr.mxu0 %v218_v20  ;;  %1555 = vmatprep.subr.mxu1 %v252_v21  ;;  %v223_v20 = vld [vmem:[%s2550_s5 + $0xd0] sm:$0xff]  ;;  %v641_v21 = vld [vmem:[%s2550_s5 + $0xde0] sm:$0xf] }
  0xc8   : > { %1487 = vmatpush1.msra.mxu0 %v217_v22  ;;  %1520 = vmatprep.mubr.f32.mxu0 %v2467_v0  ;;  %v610_v22 = vld [vmem:[%s2550_s5 + $0xce8] sm:$0xff] }
  0xc9   : > { %1556 = vmatpush1.msra.mxu1 %v251_v23  ;;  %2322 = vmatmul.mubr.msk.f32.vlgmr.msra.gmra.mxu0 %vm645_vm1, %v2951_v28  ;;  %v644_v23 = vld [vmem:[%s2550_s5 + $0xdf8] sm:$0xf] }
  0xca   : > { %1557 = vmatprep.subr.mxu1 %v220_v24  ;;  %2326 = vmatprep.subr.msk.mxu0 %vm649_vm0, %v638_v25  ;;  %v609_v24 = vld [vmem:[%s2550_s5 + $0xce0] sm:$0xff]  ;;  %v643_v25 = vld [vmem:[%s2550_s5 + $0xdf0] sm:$0xf] }
  0xcb   : > { %1558 = vmatpush1.msra.mxu1 %v219_v26  ;;  %2327 = vmatpush1.msk.msra.mxu0 %vm649_vm0, %v637_v27  ;;  %v578_v26 = vld [vmem:[%s2550_s5 + $0xbe8] sm:$0xff]  ;;  %v612_v27 = vld [vmem:[%s2550_s5 + $0xcf8] sm:$0xff] }
  0xcc   : > { %1591 = vmatprep.mubr.f32.mxu1 %v2467_v0  ;;  %1604 = vmatprep.subr.mxu0 %v606_v29  ;;  %v577_v29 = vld [vmem:[%s2550_s5 + $0xbe0] sm:$0xff] }
  0xcd   : > { %2329 = vmatprep.subr.msk.mxu1 %vm649_vm0, %v640_v30  ;;  %2325 = vmatmul.mubr.msk.f32.vlgmr.msra.gmra.mxu1 %vm645_vm1, %v2951_v28  ;;  %v611_v30 = vld [vmem:[%s2550_s5 + $0xcf0] sm:$0xff] }
  0xce   : > { %1605 = vmatpush1.msra.mxu0 %v605_v31  ;;  %2330 = vmatpush1.msk.msra.mxu1 %vm649_vm0, %v639_v32  ;;  %v546_v31 = vld [vmem:[%s2550_s5 + $0xae8] sm:$0xff]  ;;  %v580_v32 = vld [vmem:[%s2550_s5 + $0xbf8] sm:$0xff] }
  0xcf   : > { %1606 = vmatprep.subr.mxu0 %v574_v33  ;;  %1675 = vmatprep.subr.mxu1 %v608_v34  ;;  %v545_v33 = vld [vmem:[%s2550_s5 + $0xae0] sm:$0xff]  ;;  %v579_v34 = vld [vmem:[%s2550_s5 + $0xbf0] sm:$0xff] }
  0xd0   : > { %1607 = vmatpush1.msra.mxu0 %v573_v35  ;;  %1676 = vmatpush1.msra.mxu1 %v607_v36  ;;  %v514_v35 = vld [vmem:[%s2550_s5 + $0x9e8] sm:$0xff]  ;;  %v548_v36 = vld [vmem:[%s2550_s5 + $0xaf8] sm:$0xff] }
  0xd1   : > { %1608 = vmatprep.subr.mxu0 %v542_v37  ;;  %1677 = vmatprep.subr.mxu1 %v576_v38  ;;  %v513_v37 = vld [vmem:[%s2550_s5 + $0x9e0] sm:$0xff]  ;;  %v547_v38 = vld [vmem:[%s2550_s5 + $0xaf0] sm:$0xff] }
  0xd2   : > { %1609 = vmatpush1.msra.mxu0 %v541_v39  ;;  %1678 = vmatpush1.msra.mxu1 %v575_v40  ;;  %v482_v39 = vld [vmem:[%s2550_s5 + $0x8e8] sm:$0xff]  ;;  %v516_v40 = vld [vmem:[%s2550_s5 + $0x9f8] sm:$0xff] }
  0xd3   : > { %1610 = vmatprep.subr.mxu0 %v510_v41  ;;  %1679 = vmatprep.subr.mxu1 %v544_v42  ;;  %v481_v41 = vld [vmem:[%s2550_s5 + $0x8e0] sm:$0xff]  ;;  %v515_v42 = vld [vmem:[%s2550_s5 + $0x9f0] sm:$0xff] }
  0xd4   : > { %1611 = vmatpush1.msra.mxu0 %v509_v43  ;;  %1680 = vmatpush1.msra.mxu1 %v543_v44  ;;  %v450_v43 = vld [vmem:[%s2550_s5 + $0x7e8] sm:$0xff]  ;;  %v484_v44 = vld [vmem:[%s2550_s5 + $0x8f8] sm:$0xff] }
  0xd5   : > { %1612 = vmatprep.subr.mxu0 %v478_v45  ;;  %1681 = vmatprep.subr.mxu1 %v512_v46  ;;  %v449_v45 = vld [vmem:[%s2550_s5 + $0x7e0] sm:$0xff]  ;;  %v483_v46 = vld [vmem:[%s2550_s5 + $0x8f0] sm:$0xff] }
  0xd6   : > { %1613 = vmatpush1.msra.mxu0 %v477_v47  ;;  %1682 = vmatpush1.msra.mxu1 %v511_v56  ;;  %v418_v47 = vld [vmem:[%s2550_s5 + $0x6e8] sm:$0xff]  ;;  %v452_v56 = vld [vmem:[%s2550_s5 + $0x7f8] sm:$0xff] }
  0xd7   : > { %1614 = vmatprep.subr.mxu0 %v446_v48  ;;  %1683 = vmatprep.subr.mxu1 %v480_v49  ;;  %v417_v48 = vld [vmem:[%s2550_s5 + $0x6e0] sm:$0xff]  ;;  %v451_v49 = vld [vmem:[%s2550_s5 + $0x7f0] sm:$0xff] }
  0xd8   : > { %1615 = vmatpush1.msra.mxu0 %v445_v50  ;;  %1684 = vmatpush1.msra.mxu1 %v479_v51  ;;  %v386_v50 = vld [vmem:[%s2550_s5 + $0x5e8] sm:$0xff]  ;;  %v420_v51 = vld [vmem:[%s2550_s5 + $0x6f8] sm:$0xff] }
  0xd9   : > { %1616 = vmatprep.subr.mxu0 %v414_v52  ;;  %1685 = vmatprep.subr.mxu1 %v448_v53  ;;  %v385_v52 = vld [vmem:[%s2550_s5 + $0x5e0] sm:$0xff]  ;;  %v419_v53 = vld [vmem:[%s2550_s5 + $0x6f0] sm:$0xff] }
  0xda   : > { %1617 = vmatpush1.msra.mxu0 %v413_v54  ;;  %1686 = vmatpush1.msra.mxu1 %v447_v55  ;;  %v354_v54 = vld [vmem:[%s2550_s5 + $0x4e8] sm:$0xff]  ;;  %v388_v55 = vld [vmem:[%s2550_s5 + $0x5f8] sm:$0xff] }
  0xdb   : > { %1618 = vmatprep.subr.mxu0 %v382_v57  ;;  %1687 = vmatprep.subr.mxu1 %v416_v58  ;;  %v353_v57 = vld [vmem:[%s2550_s5 + $0x4e0] sm:$0xff]  ;;  %v387_v58 = vld [vmem:[%s2550_s5 + $0x5f0] sm:$0xff] }
  0xdc   : > { %1619 = vmatpush1.msra.mxu0 %v381_v59  ;;  %1688 = vmatpush1.msra.mxu1 %v415_v60  ;;  %v322_v59 = vld [vmem:[%s2550_s5 + $0x3e8] sm:$0xff]  ;;  %v356_v60 = vld [vmem:[%s2550_s5 + $0x4f8] sm:$0xff] }
  0xdd   : > { %1620 = vmatprep.subr.mxu0 %v350_v61  ;;  %1689 = vmatprep.subr.mxu1 %v384_v62  ;;  %v321_v61 = vld [vmem:[%s2550_s5 + $0x3e0] sm:$0xff]  ;;  %v355_v62 = vld [vmem:[%s2550_s5 + $0x4f0] sm:$0xff] }
  0xde   : > { %1621 = vmatpush1.msra.mxu0 %v349_v63  ;;  %1690 = vmatpush1.msra.mxu1 %v383_v1  ;;  %v290_v63 = vld [vmem:[%s2550_s5 + $0x2e8] sm:$0xff]  ;;  %v324_v1 = vld [vmem:[%s2550_s5 + $0x3f8] sm:$0xff] }
  0xdf   : > { %1622 = vmatprep.subr.mxu0 %v318_v2  ;;  %1691 = vmatprep.subr.mxu1 %v352_v3  ;;  %v289_v2 = vld [vmem:[%s2550_s5 + $0x2e0] sm:$0xff]  ;;  %v323_v3 = vld [vmem:[%s2550_s5 + $0x3f0] sm:$0xff] }
  0xe0   : > { %1623 = vmatpush1.msra.mxu0 %v317_v4  ;;  %1692 = vmatpush1.msra.mxu1 %v351_v5  ;;  %v258_v4 = vld [vmem:[%s2550_s5 + $0x1e8] sm:$0xff]  ;;  %v292_v5 = vld [vmem:[%s2550_s5 + $0x2f8] sm:$0xff] }
  0xe1   : > { %1624 = vmatprep.subr.mxu0 %v286_v6  ;;  %1693 = vmatprep.subr.mxu1 %v320_v7  ;;  %v257_v6 = vld [vmem:[%s2550_s5 + $0x1e0] sm:$0xff]  ;;  %v291_v7 = vld [vmem:[%s2550_s5 + $0x2f0] sm:$0xff] }
  0xe2   : > { %1625 = vmatpush1.msra.mxu0 %v285_v8  ;;  %1694 = vmatpush1.msra.mxu1 %v319_v9  ;;  %v226_v8 = vld [vmem:[%s2550_s5 + $0xe8] sm:$0xff]  ;;  %v260_v9 = vld [vmem:[%s2550_s5 + $0x1f8] sm:$0xff] }
  0xe3   : > { %1626 = vmatprep.subr.mxu0 %v254_v10  ;;  %1695 = vmatprep.subr.mxu1 %v288_v11  ;;  %v225_v10 = vld [vmem:[%s2550_s5 + $0xe0] sm:$0xff]  ;;  %v259_v11 = vld [vmem:[%s2550_s5 + $0x1f0] sm:$0xff] }
  0xe4   : > { %1627 = vmatpush1.msra.mxu0 %v253_v12  ;;  %1696 = vmatpush1.msra.mxu1 %v287_v13  ;;  %v228_v12 = vld [vmem:[%s2550_s5 + $0xf8] sm:$0xff]  ;;  %v227_v13 = vld [vmem:[%s2550_s5 + $0xf0] sm:$0xff] }
  0xe5   : > { %1628 = vmatprep.subr.mxu0 %v222_v14  ;;  %1697 = vmatprep.subr.mxu1 %v256_v15 }
  0xe6   : > { %1629 = vmatpush1.msra.mxu0 %v221_v16  ;;  %1662 = vmatprep.mubr.f32.mxu0 %v2467_v0 }
  0xe7   : > { %1698 = vmatpush1.msra.mxu1 %v255_v17  ;;  %2328 = vmatmul.mubr.msk.f32.vlgmr.msra.gmra.mxu0 %vm645_vm1, %v2951_v28 }
  0xe8   : > { %1699 = vmatprep.subr.mxu1 %v224_v18  ;;  %2332 = vmatprep.subr.msk.mxu0 %vm649_vm0, %v642_v19 }
  0xe9   : > { %1700 = vmatpush1.msra.mxu1 %v223_v20  ;;  %2333 = vmatpush1.msk.msra.mxu0 %vm649_vm0, %v641_v21 }
  0xea   : > { %1733 = vmatprep.mubr.f32.mxu1 %v2467_v0  ;;  %1746 = vmatprep.subr.mxu0 %v610_v22 }
  0xeb   : > { %2335 = vmatprep.subr.msk.mxu1 %vm649_vm0, %v644_v23  ;;  %2331 = vmatmul.mubr.msk.f32.vlgmr.msra.gmra.mxu1 %vm645_vm1, %v2951_v28 }
  0xec   : > { %1747 = vmatpush1.msra.mxu0 %v609_v24  ;;  %2336 = vmatpush1.msk.msra.mxu1 %vm649_vm0, %v643_v25 }
  0xed   : > { %1748 = vmatprep.subr.mxu0 %v578_v26  ;;  %1817 = vmatprep.subr.mxu1 %v612_v27 }
  0xee   : > { %1749 = vmatpush1.msra.mxu0 %v577_v29  ;;  %1818 = vmatpush1.msra.mxu1 %v611_v30 }
  0xef   : > { %1750 = vmatprep.subr.mxu0 %v546_v31  ;;  %1819 = vmatprep.subr.mxu1 %v580_v32 }
  0xf0   : > { %1751 = vmatpush1.msra.mxu0 %v545_v33  ;;  %1820 = vmatpush1.msra.mxu1 %v579_v34 }
  0xf1   : > { %1752 = vmatprep.subr.mxu0 %v514_v35  ;;  %1821 = vmatprep.subr.mxu1 %v548_v36 }
  0xf2   : > { %1753 = vmatpush1.msra.mxu0 %v513_v37  ;;  %1822 = vmatpush1.msra.mxu1 %v547_v38 }
  0xf3   : > { %1754 = vmatprep.subr.mxu0 %v482_v39  ;;  %1823 = vmatprep.subr.mxu1 %v516_v40 }
  0xf4   : > { %1755 = vmatpush1.msra.mxu0 %v481_v41  ;;  %1824 = vmatpush1.msra.mxu1 %v515_v42 }
  0xf5   : > { %1756 = vmatprep.subr.mxu0 %v450_v43  ;;  %1825 = vmatprep.subr.mxu1 %v484_v44  ;;  %v3088_v14 = vpop.f32.mrf.mxu0 }
  0xf6   : > { %1757 = vmatpush1.msra.mxu0 %v449_v45  ;;  %1826 = vmatpush1.msra.mxu1 %v483_v46  ;;  %v1915_v16 = vmul.f32 %v3088_v14, %v3088_v14 }
  0xf7   : > { %1758 = vmatprep.subr.mxu0 %v418_v47  ;;  %1827 = vmatprep.subr.mxu1 %v452_v56  ;;  %v3090_v15 = vpop.f32.mrf.mxu0  ;;  %v3096_v18 = vpop.f32.mrf.mxu1 }
  0xf8   : > { %1759 = vmatpush1.msra.mxu0 %v417_v48  ;;  %1828 = vmatpush1.msra.mxu1 %v451_v49  ;;  %v1916_v17 = vmul.f32 %v3090_v15, %v3090_v15  ;;  %v1882_v19 = vadd.f32 %v3090_v15, %v3088_v14 }
  0xf9   : > { %1760 = vmatprep.subr.mxu0 %v386_v50  ;;  %1829 = vmatprep.subr.mxu1 %v420_v51 }
  0xfa   : > { %1761 = vmatpush1.msra.mxu0 %v385_v52  ;;  %1830 = vmatpush1.msra.mxu1 %v419_v53  ;;  %v1947_v20 = vadd.f32 %v1916_v17, %v1915_v16  ;;  %v1883_v21 = vadd.f32 %v1882_v19, %v3096_v18 }
  0xfb   : > { %1762 = vmatprep.subr.mxu0 %v354_v54  ;;  %1831 = vmatprep.subr.mxu1 %v388_v55 }
  0xfc   : > { %1763 = vmatpush1.msra.mxu0 %v353_v57  ;;  %1832 = vmatpush1.msra.mxu1 %v387_v58 }
  0xfd   : > { %1764 = vmatprep.subr.mxu0 %v322_v59  ;;  %1833 = vmatprep.subr.mxu1 %v356_v60 }
  0xfe   : > { %1765 = vmatpush1.msra.mxu0 %v321_v61  ;;  %1834 = vmatpush1.msra.mxu1 %v355_v62 }
  0xff   : > { %1766 = vmatprep.subr.mxu0 %v290_v63  ;;  %1835 = vmatprep.subr.mxu1 %v324_v1 }
 0x100   : > { %1767 = vmatpush1.msra.mxu0 %v289_v2  ;;  %1836 = vmatpush1.msra.mxu1 %v323_v3 }
 0x101   : > { %1768 = vmatprep.subr.mxu0 %v258_v4  ;;  %1837 = vmatprep.subr.mxu1 %v292_v5 }
 0x102   : > { %1769 = vmatpush1.msra.mxu0 %v257_v6  ;;  %1838 = vmatpush1.msra.mxu1 %v291_v7 }
 0x103   : > { %1770 = vmatprep.subr.mxu0 %v226_v8  ;;  %1839 = vmatprep.subr.mxu1 %v260_v9 }
 0x104   : > { %1771 = vmatpush1.msra.mxu0 %v225_v10  ;;  %1804 = vmatprep.mubr.f32.mxu0 %v2467_v0 }
 0x105   : > { %1840 = vmatpush1.msra.mxu1 %v259_v11  ;;  %2334 = vmatmul.mubr.msk.f32.vlgmr.msra.gmra.mxu0 %vm645_vm1, %v2951_v28 }
 0x106   : > { %1841 = vmatprep.subr.mxu1 %v228_v12  ;;  %1875 = vmatprep.mubr.f32.mxu1 %v2467_v0  ;;  %v1917_v0 = vmul.f32 %v3096_v18, %v3096_v18 }
 0x107   : > { %1842 = vmatpush1.msra.mxu1 %v227_v13 }
 0x108   : > { %2337 = vmatmul.mubr.msk.f32.vlgmr.msra.gmra.mxu1 %vm645_vm1, %v2951_v28  ;;  %v3102_v28 = vpop.f32.mrf.mxu1  ;;  %v1948_v23 = vadd.f32 %v1947_v20, %v1917_v0 }
 0x109   : > { %v1918_v24 = vmul.f32 %v3102_v28, %v3102_v28  ;;  %v1884_v25 = vadd.f32 %v1883_v21, %v3102_v28 }
 0x10b   : > { %v1949_v29 = vadd.f32 %v1948_v23, %v1918_v24 }
 0x111   : > { %v3105_v22 = vpop.f32.mrf.mxu0 }
 0x112   : > { %v1919_v26 = vmul.f32 %v3105_v22, %v3105_v22  ;;  %v1885_v30 = vadd.f32 %v1884_v25, %v3105_v22 }
 0x113   : > { %v3112_v27 = vpop.f32.mrf.mxu0 }
 0x114   : > { %v1950_v31 = vadd.f32 %v1949_v29, %v1919_v26  ;;  %v1920_v32 = vmul.f32 %v3112_v27, %v3112_v27  ;;  %v1886_v34 = vadd.f32 %v1885_v30, %v3112_v27 }
 0x115   : > { %v3117_v33 = vpop.f32.mrf.mxu1 }
 0x116   : > { %v1951_v35 = vadd.f32 %v1950_v31, %v1920_v32  ;;  %v1921_v36 = vmul.f32 %v3117_v33, %v3117_v33  ;;  %v1887_v38 = vadd.f32 %v1886_v34, %v3117_v33 }
 0x117   : > { %v3122_v37 = vpop.f32.mrf.mxu1 }
 0x118   : > { %v1952_v40 = vadd.f32 %v1951_v35, %v1921_v36  ;;  %v1922_v41 = vmul.f32 %v3122_v37, %v3122_v37  ;;  %v1888_v42 = vadd.f32 %v1887_v38, %v3122_v37 }
 0x11a   : > { %v1953_v45 = vadd.f32 %v1952_v40, %v1922_v41 }
 0x12f   : > { %v3125_v39 = vpop.f32.mrf.mxu0 }
 0x130   : > { %v1923_v43 = vmul.f32 %v3125_v39, %v3125_v39  ;;  %v1889_v46 = vadd.f32 %v1888_v42, %v3125_v39 }
 0x131   : > { %v3132_v44 = vpop.f32.mrf.mxu0 }
 0x132   : > { %v1954_v47 = vadd.f32 %v1953_v45, %v1923_v43  ;;  %v1924_v56 = vmul.f32 %v3132_v44, %v3132_v44  ;;  %v1890_v49 = vadd.f32 %v1889_v46, %v3132_v44 }
 0x133   : > { %v3137_v48 = vpop.f32.mrf.mxu1 }
 0x134   : > { %v1955_v50 = vadd.f32 %v1954_v47, %v1924_v56  ;;  %v1925_v51 = vmul.f32 %v3137_v48, %v3137_v48  ;;  %v1891_v53 = vadd.f32 %v1890_v49, %v3137_v48 }
 0x135   : > { %v3142_v52 = vpop.f32.mrf.mxu1 }
 0x136   : > { %v1956_v55 = vadd.f32 %v1955_v50, %v1925_v51  ;;  %v1926_v57 = vmul.f32 %v3142_v52, %v3142_v52  ;;  %v1892_v58 = vadd.f32 %v1891_v53, %v3142_v52 }
 0x138   : > { %v1957_v61 = vadd.f32 %v1956_v55, %v1926_v57 }
 0x14d   : > { %v3145_v54 = vpop.f32.mrf.mxu0 }
 0x14e   : > { %v1927_v59 = vmul.f32 %v3145_v54, %v3145_v54  ;;  %v1893_v62 = vadd.f32 %v1892_v58, %v3145_v54 }
 0x14f   : > { %v3152_v60 = vpop.f32.mrf.mxu0 }
 0x150   : > { %v1958_v63 = vadd.f32 %v1957_v61, %v1927_v59  ;;  %v1928_v1 = vmul.f32 %v3152_v60, %v3152_v60  ;;  %v1894_v3 = vadd.f32 %v1893_v62, %v3152_v60 }
 0x151   : > { %v3157_v2 = vpop.f32.mrf.mxu1 }
 0x152   : > { %v1959_v4 = vadd.f32 %v1958_v63, %v1928_v1  ;;  %v1929_v5 = vmul.f32 %v3157_v2, %v3157_v2  ;;  %v1895_v7 = vadd.f32 %v1894_v3, %v3157_v2 }
 0x153   : > { %v3162_v6 = vpop.f32.mrf.mxu1 }
 0x154   : > { %v1960_v9 = vadd.f32 %v1959_v4, %v1929_v5  ;;  %v1930_v10 = vmul.f32 %v3162_v6, %v3162_v6  ;;  %v1896_v11 = vadd.f32 %v1895_v7, %v3162_v6 }
 0x156   : > { %v1961_v16 = vadd.f32 %v1960_v9, %v1930_v10 }
 0x16b   : > { %v3165_v8 = vpop.f32.mrf.mxu0 }
 0x16c   : > { %v1931_v12 = vmul.f32 %v3165_v8, %v3165_v8  ;;  %v1897_v17 = vadd.f32 %v1896_v11, %v3165_v8 }
 0x16d   : > { %v3172_v13 = vpop.f32.mrf.mxu0 }
 0x16e   : > { %v1962_v19 = vadd.f32 %v1961_v16, %v1931_v12  ;;  %v1932_v20 = vmul.f32 %v3172_v13, %v3172_v13  ;;  %v1898_v21 = vadd.f32 %v1897_v17, %v3172_v13 }
 0x16f   : > { %v3177_v0 = vpop.f32.mrf.mxu1 }
 0x170   : > { %v1963_v23 = vadd.f32 %v1962_v19, %v1932_v20  ;;  %v1933_v24 = vmul.f32 %v3177_v0, %v3177_v0  ;;  %v1899_v26 = vadd.f32 %v1898_v21, %v3177_v0 }
 0x171   : > { %v3182_v25 = vpop.f32.mrf.mxu1 }
 0x172   : > { %v1964_v30 = vadd.f32 %v1963_v23, %v1933_v24  ;;  %v1934_v31 = vmul.f32 %v3182_v25, %v3182_v25  ;;  %v1900_v32 = vadd.f32 %v1899_v26, %v3182_v25 }
 0x174   : > { %v1965_v36 = vadd.f32 %v1964_v30, %v1934_v31 }
 0x189   : > { %v3185_v29 = vpop.f32.mrf.mxu0 }
 0x18a   : > { %v1935_v34 = vmul.f32 %v3185_v29, %v3185_v29  ;;  %v1901_v38 = vadd.f32 %v1900_v32, %v3185_v29 }
 0x18b   : > { %v3192_v35 = vpop.f32.mrf.mxu0 }
 0x18c   : > { %v1966_v40 = vadd.f32 %v1965_v36, %v1935_v34  ;;  %v1936_v41 = vmul.f32 %v3192_v35, %v3192_v35  ;;  %v1902_v43 = vadd.f32 %v1901_v38, %v3192_v35 }
 0x18d   : > { %v3197_v42 = vpop.f32.mrf.mxu1 }
 0x18e   : > { %v1967_v45 = vadd.f32 %v1966_v40, %v1936_v41  ;;  %v1937_v46 = vmul.f32 %v3197_v42, %v3197_v42  ;;  %v1903_v56 = vadd.f32 %v1902_v43, %v3197_v42 }
 0x18f   : > { %v3202_v47 = vpop.f32.mrf.mxu1 }
 0x190   : > { %v1968_v50 = vadd.f32 %v1967_v45, %v1937_v46  ;;  %v1938_v51 = vmul.f32 %v3202_v47, %v3202_v47  ;;  %v1904_v53 = vadd.f32 %v1903_v56, %v3202_v47 }
 0x192   : > { %v1969_v58 = vadd.f32 %v1968_v50, %v1938_v51 }
 0x1a7   : > { %v3205_v49 = vpop.f32.mrf.mxu0 }
 0x1a8   : > { %v1939_v55 = vmul.f32 %v3205_v49, %v3205_v49  ;;  %v1905_v59 = vadd.f32 %v1904_v53, %v3205_v49 }
 0x1a9   : > { %v3212_v57 = vpop.f32.mrf.mxu0 }
 0x1aa   : > { %v1970_v61 = vadd.f32 %v1969_v58, %v1939_v55  ;;  %v1940_v62 = vmul.f32 %v3212_v57, %v3212_v57  ;;  %v1906_v1 = vadd.f32 %v1905_v59, %v3212_v57 }
 0x1ab   : > { %v3217_v63 = vpop.f32.mrf.mxu1 }
 0x1ac   : > { %v1971_v3 = vadd.f32 %v1970_v61, %v1940_v62  ;;  %v1941_v4 = vmul.f32 %v3217_v63, %v3217_v63  ;;  %v1907_v7 = vadd.f32 %v1906_v1, %v3217_v63 }
 0x1ad   : > { %v3222_v5 = vpop.f32.mrf.mxu1 }
 0x1ae   : > { %v1972_v9 = vadd.f32 %v1971_v3, %v1941_v4  ;;  %v1942_v10 = vmul.f32 %v3222_v5, %v3222_v5  ;;  %v1908_v11 = vadd.f32 %v1907_v7, %v3222_v5 }
 0x1b0   : > { %v1973_v16 = vadd.f32 %v1972_v9, %v1942_v10 }
 0x1c5   : > { %v3228_v12 = vpop.f32.mrf.mxu0 }
 0x1c6   : > { %v1909_v17 = vadd.f32 %v1908_v11, %v3228_v12  ;;  %v1943_v19 = vmul.f32 %v3228_v12, %v3228_v12 }
 0x1c7   : > { %v3233_v20 = vpop.f32.mrf.mxu0 }
 0x1c8   : > { %v3235_v21 = vpop.f32.mrf.mxu1  ;;  %v1974_v23 = vadd.f32 %v1973_v16, %v1943_v19  ;;  %v1910_v24 = vadd.f32 %v1909_v17, %v3233_v20  ;;  %v1944_v26 = vmul.f32 %v3233_v20, %v3233_v20 }
 0x1c9   : > { %v1945_v30 = vmul.f32 %v3235_v21, %v3235_v21 }
 0x1ca   : > { %v1975_v31 = vadd.f32 %v1974_v23, %v1944_v26  ;;  %v1911_v32 = vadd.f32 %v1910_v24, %v3235_v21  ;;  %v3243_v34 = vpop.f32.mrf.mxu1 }
 0x1cb   : > { %v1946_v40 = vmul.f32 %v3243_v34, %v3243_v34 }
 0x1cc   : > { %v1912_v36 = vadd.f32 %v1911_v32, %v3243_v34  ;;  %v1976_v38 = vadd.f32 %v1975_v31, %v1945_v30 }
 0x1ce   : > { %1913 = vadd.xlane.f32.xlu0 %v1912_v36  ;;  %v1977_v41 = vadd.f32 %v1976_v38, %v1946_v40 }
 0x1d2   : > { %1978 = vadd.xlane.f32.xlu0 %v1977_v41 }
 0x257   : > { %v1914_v43 = vpop.xlane.xlu0 %1913 }
 0x258   : > { %v2023_v45 = vrot.slane %v1914_v43, 4  ;;  %v1983_v46 = vsel %vm1982_vm2, %v1914_v43, 0.0 }
 0x259   : > { %1984 = vadd.xlane.f32.xlu1 %v1983_v46 }
 0x25a   : > { %v2025_v56 = vsel %vm1982_vm2, %v2023_v45, 0.0 }
 0x25b   : > { %2026 = vadd.xlane.f32.xlu0 %v2025_v56  ;;  %v1979_v50 = vpop.xlane.xlu0 %1978 }
 0x25c   : > { %v2036_v51 = vrot.slane %v1979_v50, 4  ;;  %v1993_v53 = vsel %vm1982_vm2, %v1979_v50, 0.0 }
 0x25d   : > { %1994 = vadd.xlane.f32.xlu1 %v1993_v53  ;;  %v2468_v53 = vmov 0  }
 0x25e   : > { %v2038_v55 = vsel %vm1982_vm2, %v2036_v51, 0.0  ;;  %2398 = vset.pattern.permute.xlu0 %v2468_v53  ;;  %2399 = vset.pattern.permute.xlu1 %v2468_v53 }
 0x261   : > { %2039 = vadd.xlane.f32.xlu1 %v2038_v55  ;;  %v1980_v55 = vlaneseq }
 0x2e2   : > { %v1985_v58 = vpop.xlane.xlu1 %1984 }
 0x2e3   : > { %v1986_v59 = vrot.slane %v1985_v58, 4 }
 0x2e4   : > { %v2027_v23 = vpop.xlane.xlu0 %2026 }
 0x2e5   : > { %v1987_v61 = vadd.f32 %v1986_v59, %v1985_v58  ;;  %v2028_v26 = vrot.slane %v2027_v23, 4  ;;  %v1981_v58 = vshrl.u32 %v1980_v55, 7 }
 0x2e6   : > { %v1995_v62 = vpop.xlane.xlu1 %1994 }
 0x2e7   : > { %v1988_v1 = vrot.slane %v1987_v61, 2  ;;  %v1996_v3 = vrot.slane %v1995_v62, 4  ;;  %v2029_v31 = vadd.f32 %v2028_v26, %v2027_v23  ;;  %vm2016_vm3 = vcmp.lt.s32.totalorder %v1981_v58, 4 }
 0x2e8   : > { %vm2060_vm4 = vcmp.ge.s32.totalorder %v1981_v58, 4 }
 0x2e9   : > { %v1997_v4 = vadd.f32 %v1996_v3, %v1995_v62  ;;  %v1989_v7 = vadd.f32 %v1988_v1, %v1987_v61  ;;  %v2030_v38 = vrot.slane %v2029_v31, 2 }
 0x2ea   : > { %v2040_v24 = vpop.xlane.xlu1 %2039 }
 0x2eb   : > { %v1998_v9 = vrot.slane %v1997_v4, 2  ;;  %v1990_v10 = vrot.slane %v1989_v7, 1  ;;  %v2041_v30 = vrot.slane %v2040_v24, 4  ;;  %v2031_v41 = vadd.f32 %v2030_v38, %v2029_v31 }
 0x2ed   : > { %v1991_v11 = vadd.f32 %v1990_v10, %v1989_v7  ;;  %v1999_v16 = vadd.f32 %v1998_v9, %v1997_v4  ;;  %v2042_v32 = vadd.f32 %v2041_v30, %v2040_v24  ;;  %v2032_v45 = vrot.slane %v2031_v41, 1  ;;  %v2067_v9 = vld [vmem:[%s3430_s2] sm:$0xff] }
 0x2ef   : > { %2345 = vpush %v1991_v11  ;;  %v2000_v17 = vrot.slane %v1999_v16, 1  ;;  %v2043_v40 = vrot.slane %v2042_v32, 2  ;;  %v2033_v50 = vadd.f32 %v2032_v45, %v2031_v41 }
 0x2f1   : > { %v2001_v19 = vadd.f32 %v2000_v17, %v1999_v16  ;;  %v2044_v43 = vadd.f32 %v2043_v40, %v2042_v32 }
 0x2f3   : > { %2347 = vpush %v2001_v19  ;;  %v2045_v46 = vrot.slane %v2044_v43, 1  ;;  %v2069_v19 = vld [vmem:[%s3431_s3] sm:$0xff] }
 0x2f5   : > { %v2046_v51 = vadd.f32 %v2045_v46, %v2044_v43 }
 0x320   : > { %s2346_s10 = spop %2345 }
 0x321   : > { %s3248_s11 = smul.f32 6.1035156e-05, %s2346_s10 }
 0x323   : > { %s2009_s12 = smul.f32 %s3248_s11, %s3248_s11  ;;  %v2018_v59 = vstv %s3248_s11 }
 0x324   : > { %s2348_s13 = spop %2347  ;;  %v2019_v61 = vsel %vm2016_vm3, %v2018_v59, 0.0 }
 0x325   : > { %s2008_s14 = smul.f32 6.1035156e-05, %s2348_s13  ;;  %s188_s13 = sand.u32 1, %s2457_s16  }
 0x327   : > { %s2010_s20 = ssub.f32 %s2008_s14, %s2009_s12  ;;  %s2288_s14 = sshll.u32 %s188_s13, 8 }
 0x329   : > { %s2011_s22 = sadd.f32 1e-05, %s2010_s20  ;;  %s3330_s20 = scalar_lea.vmem [#allocation2], %s2288_s14 }
 0x32b   : > { %v2012_v36 = vstv %s2011_s22  ;;  %s2343_s22 = sshll.u32 %s2516_s19, 12 }
 0x32c   : > { %2400 = vrsqrt.f32 %v2012_v36 }
 0x339   : > { %v2401_v56 = vpop.eup %2400 }
 0x33a   : > { %2349 = vpush %v2401_v56 }
 0x33b   : > { %2351 = vpush %v2033_v50 }
 0x33c   : > { %2353 = vpush %v2046_v51 }
 0x36b   : > { %s2350_s23 = spop %2349 }
 0x36c   : > { %s2352_s27 = spop %2351  ;;  %v2020_v7 = vstv %s2350_s23  ;;  %s2225_s23 = sshll.u32 %s3330_s20, 4  ;;  %s3379_s23 = int_to_ptr.vmem [resolvable:$true] %s2225_s23 }
 0x36d   : > { %s2050_s28 = smul.f32 6.1035156e-05, %s2352_s27  ;;  %s2354_s29 = spop %2353  ;;  %v2021_v10 = vsel %vm2016_vm3, %v2020_v7, 0.0 }
 0x36e   : > { %s2053_s30 = smul.f32 6.1035156e-05, %s2354_s29  ;;  %s2211_s29 = scalar_lea.sflag [#allocation3], %s188_s13 }
 0x36f   : > { %s2054_s5 = smul.f32 %s2050_s28, %s2050_s28  ;;  %v2063_v62 = vstv %s2050_s28  ;;  %s3377_s28 = scalar_lea.hbm %s3432_s4, %s2343_s22 }
 0x370   : > { %v2064_v1 = vsel %vm2060_vm4, %v2063_v62, %v2019_v61 }
 0x371   : > { %s2055_s6 = ssub.f32 %s2053_s30, %s2054_s5  ;;  %s2405_s30 = scalar_lea.vmem %s3379_s23, 4096 }
 0x372   : > { %p2406_p11 = scmp.ne.s32.totalorder %s3379_s23, %s2405_s30  ;;  %s2469_s5 = smov [#allocation2]  }
 0x373   : > { %s2056_s7 = sadd.f32 1e-05, %s2055_s6  ;;  %s2409_s6 = sshll.u32 %s2469_s5, 4  ;;  %s2410_s6 = int_to_ptr.vmem [resolvable:$false] %s2409_s6 }
 0x374   : > { %p2407_p12 = pnand %p2406_p11, %p2533_p5  ;;  %p2412_p0 = scmp.lt.s32.totalorder %s3379_s23, %s2410_s6 }
 0x375   : > { %v2057_v3 = vstv %s2056_s7  ;;  %s2411_s7 = scalar_lea.vmem %s2410_s6, 8192 }
 0x376   : > { %2402 = vrsqrt.f32 %v2057_v3  ;;  %p2408_p13 = pneg %p2407_p12  ;;  %p2413_p1 = scmp.lt.s32.totalorder %s2411_s7, %s2405_s30 }
 0x378   : > { %p2414_p2 = por %p2413_p1, %p2412_p0 }
 0x37a   : > { %p2415_p3 = pnand %p2414_p2, %p2408_p13 }
 0x383   : > { %v2403_v4 = vpop.eup %2402 }
 0x384   : > { %2355 = vpush %v2403_v4 }
 0x3b5   : > { %s2356_s8 = spop %2355 }
 0x3b6   : > { %v2065_v11 = vstv %s2356_s8 }
 0x3b7   : > { %v2066_v16 = vsel %vm2060_vm4, %v2065_v11, %v2021_v10 }
 0x3b8   : > { %v2068_v17 = vmul.f32 %v2067_v9, %v2066_v16 }
 0x3ba   : > { %v2070_v23 = vmul.f32 %v2068_v17, %v2064_v1  ;;  %2074 = vperm.xlu0 %2398, %v2068_v17  }
 0x3bc   : > { %v2071_v24 = vsub.f32 %v2069_v19, %v2070_v23 }
 0x3be   : > { %2111 = vperm.xlu1 %2399, %v2071_v24  }
 0x435   : > { %v2075_v26 = vpop.permute.xlu0 %2074 }
 0x436   : > { %v2077_v30 = vmul.f32 %v2075_v26, %v3088_v14  ;;  %v2078_v31 = vmul.f32 %v2075_v26, %v3090_v15  ;;  %v2079_v32 = vmul.f32 %v2075_v26, %v3096_v18  ;;  %v2080_v36 = vmul.f32 %v2075_v26, %v3102_v28 }
 0x437   : > { %v2081_v38 = vmul.f32 %v2075_v26, %v3105_v22  ;;  %v2082_v40 = vmul.f32 %v2075_v26, %v3112_v27  ;;  %v2083_v41 = vmul.f32 %v2075_v26, %v3117_v33  ;;  %v2084_v43 = vmul.f32 %v2075_v26, %v3122_v37 }
 0x438   : > { %v2085_v45 = vmul.f32 %v2075_v26, %v3125_v39  ;;  %v2086_v46 = vmul.f32 %v2075_v26, %v3132_v44  ;;  %v2087_v14 = vmul.f32 %v2075_v26, %v3137_v48  ;;  %v2088_v15 = vmul.f32 %v2075_v26, %v3142_v52 }
 0x439   : > { %v2089_v18 = vmul.f32 %v2075_v26, %v3145_v54  ;;  %v2090_v28 = vmul.f32 %v2075_v26, %v3152_v60  ;;  %v2091_v22 = vmul.f32 %v2075_v26, %v3157_v2  ;;  %v2092_v27 = vmul.f32 %v2075_v26, %v3162_v6  ;;  %v2112_v2 = vpop.permute.xlu1 %2111 }
 0x43a   : > { %v2093_v33 = vmul.f32 %v2075_v26, %v3165_v8  ;;  %v2094_v37 = vmul.f32 %v2075_v26, %v3172_v13  ;;  %v2095_v39 = vmul.f32 %v2075_v26, %v3177_v0  ;;  %v2096_v44 = vmul.f32 %v2075_v26, %v3182_v25 }
 0x43b   : > { %v2097_v48 = vmul.f32 %v2075_v26, %v3185_v29  ;;  %v2098_v52 = vmul.f32 %v2075_v26, %v3192_v35  ;;  %v2099_v54 = vmul.f32 %v2075_v26, %v3197_v42  ;;  %v2100_v60 = vmul.f32 %v2075_v26, %v3202_v47 }
 0x43c   : > { %v2101_v6 = vmul.f32 %v2075_v26, %v3205_v49  ;;  %v2102_v8 = vmul.f32 %v2075_v26, %v3212_v57  ;;  %v2103_v13 = vmul.f32 %v2075_v26, %v3217_v63  ;;  %v2104_v0 = vmul.f32 %v2075_v26, %v3222_v5 }
 0x43d   : > { %v2105_v25 = vmul.f32 %v2075_v26, %v3228_v12  ;;  %v2106_v29 = vmul.f32 %v2075_v26, %v3233_v20  ;;  %v2107_v35 = vmul.f32 %v2075_v26, %v3235_v21  ;;  %v2108_v56 = vmul.f32 %v2075_v26, %v3243_v34 }
 0x43e   : > { %v2114_v42 = vadd.f32 %v2112_v2, %v2077_v30  ;;  %v2115_v50 = vadd.f32 %v2112_v2, %v2078_v31  ;;  %v2116_v47 = vadd.f32 %v2112_v2, %v2079_v32  ;;  %v2117_v51 = vadd.f32 %v2112_v2, %v2080_v36 }
 0x43f   : > { %v2118_v49 = vadd.f32 %v2112_v2, %v2081_v38  ;;  %v2119_v57 = vadd.f32 %v2112_v2, %v2082_v40  ;;  %v2120_v53 = vadd.f32 %v2112_v2, %v2083_v41  ;;  %v2121_v63 = vadd.f32 %v2112_v2, %v2084_v43 }
 0x440   : > { %v2122_v55 = vadd.f32 %v2112_v2, %v2085_v45  ;;  %v2123_v5 = vadd.f32 %v2112_v2, %v2086_v46  ;;  %v2124_v58 = vadd.f32 %v2112_v2, %v2087_v14  ;;  %v2125_v12 = vadd.f32 %v2112_v2, %v2088_v15 }
 0x441   : > { %v2126_v59 = vadd.f32 %v2112_v2, %v2089_v18  ;;  %v2127_v20 = vadd.f32 %v2112_v2, %v2090_v28  ;;  %v2128_v61 = vadd.f32 %v2112_v2, %v2091_v22  ;;  %v2129_v21 = vadd.f32 %v2112_v2, %v2092_v27 }
 0x442   : > { %v3298_v34 = vadd.f32 %v2112_v2, %v2093_v33  ;;  %v3300_v62 = vadd.f32 %v2112_v2, %v2094_v37  ;;  %v3302_v1 = vadd.f32 %v2112_v2, %v2095_v39  ;;  %v3304_v3 = vadd.f32 %v2112_v2, %v2096_v44 }
 0x443   : > { %v3306_v4 = vadd.f32 %v2112_v2, %v2097_v48  ;;  %v3308_v7 = vadd.f32 %v2112_v2, %v2098_v52  ;;  %v3310_v9 = vadd.f32 %v2112_v2, %v2099_v54  ;;  %v3312_v10 = vadd.f32 %v2112_v2, %v2100_v60 }
 0x444   : > { %v3314_v11 = vadd.f32 %v2112_v2, %v2101_v6  ;;  %v3316_v16 = vadd.f32 %v2112_v2, %v2102_v8  ;;  %v3318_v17 = vadd.f32 %v2112_v2, %v2103_v13  ;;  %v3320_v19 = vadd.f32 %v2112_v2, %v2104_v0 }
 0x445   : > { %v3322_v23 = vadd.f32 %v2112_v2, %v2105_v25  ;;  %v3324_v24 = vadd.f32 %v2112_v2, %v2106_v29  ;;  %v3326_v26 = vadd.f32 %v2112_v2, %v2107_v35  ;;  %v3328_v30 = vadd.f32 %v2112_v2, %v2108_v56 }
 0x446   : > { %v2146_v31 = vmax.f32 %v2114_v42, 0.0  ;;  %v2147_v32 = vmax.f32 %v2115_v50, 0.0  ;;  %v2148_v36 = vmax.f32 %v2116_v47, 0.0  ;;  %v2149_v38 = vmax.f32 %v2117_v51, 0.0 }
 0x447   : > { %v2150_v40 = vmax.f32 %v2118_v49, 0.0  ;;  %v2151_v41 = vmax.f32 %v2119_v57, 0.0  ;;  %v2152_v43 = vmax.f32 %v2120_v53, 0.0  ;;  %v2153_v45 = vmax.f32 %v2121_v63, 0.0 }
 0x448   : > { %v2154_v46 = vmax.f32 %v2122_v55, 0.0  ;;  %v2155_v14 = vmax.f32 %v2123_v5, 0.0  ;;  %v2156_v15 = vmax.f32 %v2124_v58, 0.0  ;;  %v2157_v18 = vmax.f32 %v2125_v12, 0.0  ;;  %2178 = vst [vmem:[%s3330_s20] sm:$0xff] %v2146_v31  ;;  %2179 = vst [vmem:[%s3330_s20 + $0x8] sm:$0xff] %v2147_v32 }
 0x449   : > { %2180 = vst [vmem:[%s3330_s20 + $0x10] sm:$0xff] %v2148_v36  ;;  %2181 = vst [vmem:[%s3330_s20 + $0x18] sm:$0xff] %v2149_v38  ;;  %v2158_v28 = vmax.f32 %v2126_v59, 0.0  ;;  %v2159_v22 = vmax.f32 %v2127_v20, 0.0  ;;  %v2160_v27 = vmax.f32 %v2128_v61, 0.0  ;;  %v2161_v33 = vmax.f32 %v2129_v21, 0.0 }
 0x44a   : > { %2182 = vst [vmem:[%s3330_s20 + $0x20] sm:$0xff] %v2150_v40  ;;  %2183 = vst [vmem:[%s3330_s20 + $0x28] sm:$0xff] %v2151_v41  ;;  %v2162_v37 = vmax.f32 %v3298_v34, 0.0  ;;  %v2163_v39 = vmax.f32 %v3300_v62, 0.0  ;;  %v2164_v44 = vmax.f32 %v3302_v1, 0.0  ;;  %v2165_v48 = vmax.f32 %v3304_v3, 0.0 }
 0x44b   : > { %2184 = vst [vmem:[%s3330_s20 + $0x30] sm:$0xff] %v2152_v43  ;;  %2185 = vst [vmem:[%s3330_s20 + $0x38] sm:$0xff] %v2153_v45  ;;  %v2166_v52 = vmax.f32 %v3306_v4, 0.0  ;;  %v2167_v54 = vmax.f32 %v3308_v7, 0.0  ;;  %v2168_v60 = vmax.f32 %v3310_v9, 0.0  ;;  %v2169_v2 = vmax.f32 %v3312_v10, 0.0 }
 0x44c   : > { %2186 = vst [vmem:[%s3330_s20 + $0x40] sm:$0xff] %v2154_v46  ;;  %2187 = vst [vmem:[%s3330_s20 + $0x48] sm:$0xff] %v2155_v14  ;;  %v2170_v6 = vmax.f32 %v3314_v11, 0.0  ;;  %v2171_v8 = vmax.f32 %v3316_v16, 0.0  ;;  %v2172_v13 = vmax.f32 %v3318_v17, 0.0  ;;  %v2173_v0 = vmax.f32 %v3320_v19, 0.0 }
 0x44d   : > { %2188 = vst [vmem:[%s3330_s20 + $0x50] sm:$0xff] %v2156_v15  ;;  %2189 = vst [vmem:[%s3330_s20 + $0x58] sm:$0xff] %v2157_v18  ;;  %v2174_v25 = vmax.f32 %v3322_v23, 0.0  ;;  %v2175_v29 = vmax.f32 %v3324_v24, 0.0  ;;  %v2176_v35 = vmax.f32 %v3326_v26, 0.0  ;;  %v2177_v56 = vmax.f32 %v3328_v30, 0.0 }
 0x44e   : > { %2190 = vst [vmem:[%s3330_s20 + $0x60] sm:$0xff] %v2158_v28  ;;  %2191 = vst [vmem:[%s3330_s20 + $0x68] sm:$0xff] %v2159_v22 }
 0x44f   : > { %2192 = vst [vmem:[%s3330_s20 + $0x70] sm:$0xff] %v2160_v27  ;;  %2193 = vst [vmem:[%s3330_s20 + $0x78] sm:$0xff] %v2161_v33 }
 0x450   : > { %2194 = vst [vmem:[%s3330_s20 + $0x80] sm:$0xff] %v2162_v37  ;;  %2195 = vst [vmem:[%s3330_s20 + $0x88] sm:$0xff] %v2163_v39 }
 0x451   : > { %2196 = vst [vmem:[%s3330_s20 + $0x90] sm:$0xff] %v2164_v44  ;;  %2197 = vst [vmem:[%s3330_s20 + $0x98] sm:$0xff] %v2165_v48 }
 0x452   : > { %2198 = vst [vmem:[%s3330_s20 + $0xa0] sm:$0xff] %v2166_v52  ;;  %2199 = vst [vmem:[%s3330_s20 + $0xa8] sm:$0xff] %v2167_v54 }
 0x453   : > { %2200 = vst [vmem:[%s3330_s20 + $0xb0] sm:$0xff] %v2168_v60  ;;  %2201 = vst [vmem:[%s3330_s20 + $0xb8] sm:$0xff] %v2169_v2 }
 0x454   : > { %2202 = vst [vmem:[%s3330_s20 + $0xc0] sm:$0xff] %v2170_v6  ;;  %2203 = vst [vmem:[%s3330_s20 + $0xc8] sm:$0xff] %v2171_v8 }
 0x455   : > { %2204 = vst [vmem:[%s3330_s20 + $0xd0] sm:$0xff] %v2172_v13  ;;  %2205 = vst [vmem:[%s3330_s20 + $0xd8] sm:$0xff] %v2173_v0 }
 0x456   : > { %2206 = vst [vmem:[%s3330_s20 + $0xe0] sm:$0xff] %v2174_v25  ;;  %2207 = vst [vmem:[%s3330_s20 + $0xe8] sm:$0xff] %v2175_v29 }
 0x457   : > { %2208 = vst [vmem:[%s3330_s20 + $0xf0] sm:$0xff] %v2176_v35  ;;  %2209 = vst [vmem:[%s3330_s20 + $0xf8] sm:$0xff] %v2177_v56 }
 0x458   : > { %2418 = shalt.err (!%p2415_p3)
}
 0x459   : > { %s2419_s8 = scalar_lea.hbm %s3377_s28, 4096  ;;  %s2423_s11 = scalar_lea.hbm %s3432_s4, 8192 }
 0x45a   : > { %p2420_p4 = scmp.ne.s32.totalorder %s3377_s28, %s2419_s8  ;;  %p2424_p9 = scmp.lt.s32.totalorder %s3377_s28, %s3432_s4 }
 0x45b   : > { %p2425_p10 = scmp.lt.s32.totalorder %s2423_s11, %s2419_s8 }
 0x45c   : > { %p2421_p7 = pnand %p2420_p4, %p2533_p5 }
 0x45d   : > { %p2426_p11 = por %p2425_p10, %p2424_p9 }
 0x45e   : > { %p2422_p8 = pneg %p2421_p7 }
 0x460   : > { %p2427_p12 = pnand %p2426_p11, %p2422_p8 }
 0x462   : > { %2430 = shalt.err (!%p2427_p12)
}
 0x463   : > { %2357 = dma.vmem_to_hbm [thread:$0]  (%p2533_p5), %s3379_s23, 4096, %s3377_s28, %s2211_s29  }
 0x464 PF: > { %p2363_p13 = scmp.ge.s32.totalorder %s2465_s18, 2  ;;  %s2237_s14 = sand.u32 1, %s2453_s15  }
 0x465   : > { %s2238_s20 = scalar_lea.sflag [#allocation3], %s2237_s14 }
 0x466   : > { %p2360_p0 = pnand %p2363_p13, %p2537_p6 }
 0x468   : > { %p2361_p1 = pneg %p2360_p0 }
 0x46a   : > { %2448 = dma.done.wait (%p2361_p1), %s2238_s20, 4096  }
 0x46b   : > { %2450 = vsyncadd (%p2361_p1), %s2238_s20, 4294963200  ;;  %p14_p2 = scmp.ge.s32.totalorder %s2520_s21, 4   ;;  %s3435_s15 = smov %s2457_s16 }
 0x46c   : > { %s3436_s16 = smov %s2461_s17  ;;  %s3437_s17 = smov %s2531_s24 }
 0x46d   : > { %s3438_s18 = smov %s2520_s21  ;;  %16 = sbr.rel (!%p14_p2) target bundleno = 3 (0x3), region = 71 }
 0x472   :  { %2243 = vsyncpa [#allocation3], 1 }
 0x473   :  { %2245 = vsyncpa [#allocation3 + $0x1], 1 }

</bundles_post_ra>
